<compile_context>
chip_gen: v5e
topology: v5e:2x2
jax: 0.10.0
libtpu: 0.0.40
codegen_flags: <defaults>
</compile_context>

<pallas_src>
import functools

import jax
import jax.numpy as jnp
from jax.experimental import pallas as pl
from jax.experimental.pallas import tpu as pltpu


def _dw_stats_kernel(x_ref, dw_ref, z_ref, m_ref, c_ref, xr_ref, xs_ref, *,
                     NB, C_in, KH, KW, H, W, H_out, W_out, stride, dilation,
                     padding):
    """Pass 1: in-kernel pad + ReLU + depthwise dilated conv + z moments.

    Emits z (per-channel planes) and per-image centered moments of z:
      m_ref[b, 0, c] = mean_{hw} z[c]
      c_ref[b, c, d] = sum_{hw} (z[c] - m[c]) * (z[d] - m[d])
    """
    inv_hw = 1.0 / float(H_out * W_out)
    for b in range(NB):
        # --- zero-pad + ReLU, applied exactly once per input element --------
        if padding > 0:
            xr_ref[...] = jnp.zeros_like(xr_ref)          # halo zeros
        xr_ref[:, pl.ds(padding, H), pl.ds(padding, W)] = jnp.maximum(
            x_ref[b].astype(jnp.float32), 0.0)

        # --- column-pre-shifted scratch: KW*C_in lane-offset loads instead of
        #     KH*KW*C_in; the per-tap reads below are lane-aligned -----------
        for kw in range(KW):
            w0 = kw * dilation
            for ci in range(C_in):
                if stride == 1:
                    xs_ref[kw, ci] = xr_ref[ci, :, pl.ds(w0, W_out)]
                else:
                    # TODO(synk): stride>1 lane subselect; if this path gets hot
                    # move the stride onto the sublane axis instead.
                    win = xr_ref[ci, :, pl.ds(w0, (W_out - 1) * stride + 1)]
                    xs_ref[kw, ci] = win[:, ::stride]

        # --- depthwise dilated conv + centered per-image moments of z -------
        means = []                      # (1, 1) tiles
        cent = []                       # centered (H_out, W_out) planes
        for ci in range(C_in):
            acc = jnp.zeros((H_out, W_out), jnp.float32)
            for kh in range(KH):
                h0 = kh * dilation
                for kw in range(KW):
                    if stride == 1:
                        patch = xs_ref[kw, ci, pl.ds(h0, H_out), :]
                    else:
                        patch = xs_ref[kw, ci, pl.ds(h0, H_out, stride), :]
                    acc = acc + patch * dw_ref[ci, kh * KW + kw]   # SMEM scalar
            z_ref[b, ci] = acc.astype(z_ref.dtype)
            mci = jnp.sum(jnp.sum(acc, axis=1, keepdims=True),
                          axis=0, keepdims=True) * inv_hw          # (1, 1)
            means.append(mci)
            cent.append(acc - mci)
        m_ref[b] = jnp.concatenate(means, axis=1)                  # (1, C_in)

        # TODO(synk): for large C_in compute the cross moments as a z @ z.T MXU
        # matmul (and only the upper triangle) instead of this unrolled loop.
        rows = []
        for ci in range(C_in):
            row = [jnp.sum(jnp.sum(cent[ci] * cent[cj], axis=1, keepdims=True),
                           axis=0, keepdims=True)
                   for cj in range(C_in)]
            rows.append(jnp.concatenate(row, axis=1))              # (1, C_in)
        c_ref[b] = jnp.concatenate(rows, axis=0)                   # (C_in, C_in)


def _pointwise_kernel(z_ref, pwf_ref, shift_ref, out_ref, *, NB, C_in, C_out):
    """Pass 2: BN-folded 1x1 conv + shift, fully lane-dense (rows = H_out*W_out)."""
    # TODO(synk): for C_in/C_out >= ~64 (v5e) / ~128 (v6e, v7x), switch this
    # broadcast-FMA loop to a single jnp.dot on the MXU (pw as a VMEM tile).
    for b in range(NB):
        # z rows loaded once per image; live set = C_in rows (tile ci if large).
        zrows = [z_ref[b, pl.ds(ci, 1), :].astype(jnp.float32)
                 for ci in range(C_in)]
        for co in range(C_out):
            y = zrows[0] * pwf_ref[co, 0]
            for ci in range(1, C_in):
                y = y + zrows[ci] * pwf_ref[co, ci]
            out_ref[b, pl.ds(co, 1), :] = (y + shift_ref[co]).astype(out_ref.dtype)


def _pick_batch_block(N, per_image_bytes, target_bytes=512 * 1024):
    # Fold images so each grid step moves a few hundred KB (per-step overhead
    # ~0.35us on a serial grid), but keep >= 2 steps when N >= 2 so a v7x
    # megacore split ("parallel" axis) gives both TensorCores work.
    bn = max(1, min(N, target_bytes // max(per_image_bytes, 1)))
    if N >= 2:
        bn = max(1, min(bn, N // 2))
    while N % bn:
        bn -= 1
    return bn


def dil_conv_forward(x_nchw, dw_w, pw_w, gamma, beta, *, stride, padding,
                     dilation, eps=1e-5):
    N, C_in, H, W = x_nchw.shape
    C_out = pw_w.shape[0]
    KH, KW = dw_w.shape[2], dw_w.shape[3]
    H_out = (H + 2 * padding - dilation * (KH - 1) - 1) // stride + 1
    W_out = (W + 2 * padding - dilation * (KW - 1) - 1) // stride + 1
    Hp, Wp = H + 2 * padding, W + 2 * padding
    HW = H_out * W_out

    # I/O dtype follows x (bf16 x halves HBM bytes on v6e/v7x); compute is f32.
    io_dtype = jnp.bfloat16 if x_nchw.dtype == jnp.bfloat16 else jnp.float32

    dw = dw_w[:, 0, :, :].reshape(C_in, KH * KW).astype(jnp.float32)  # (C_in, KH*KW)
    pw = pw_w[:, :, 0, 0].astype(jnp.float32)                         # (C_out, C_in)

    bn = _pick_batch_block(N, C_in * H * W * x_nchw.dtype.itemsize)
    steps = N // bn

    smem = pl.BlockSpec(memory_space=pltpu.MemorySpace.SMEM)
    x_spec = pl.BlockSpec((bn, C_in, H, W), lambda n: (n, 0, 0, 0))

    # VMEM budget: double-buffered in/out blocks + scratches, capped at v7x's
    # 64 MiB per-core physical VMEM.
    step_bytes = (2 * (bn * C_in * H * W * x_nchw.dtype.itemsize
                       + bn * C_in * HW * jnp.dtype(io_dtype).itemsize)
                  + 4 * (C_in * Hp * Wp + KW * C_in * Hp * W_out))
    vmem_limit = int(min(64 * 2**20, max(32 * 2**20, 8 * step_bytes)))
    cparams = pltpu.CompilerParams(
        dimension_semantics=("parallel",),        # batch steps split across TCs
        vmem_limit_bytes=vmem_limit)

    # ---- Pass 1: pad + ReLU + depthwise; z + per-image centered z moments ----
    static1 = dict(NB=bn, C_in=C_in, KH=KH, KW=KW, H=H, W=W, H_out=H_out,
                   W_out=W_out, stride=stride, dilation=dilation,
                   padding=padding)
    z, m_img, c_img = pl.pallas_call(
        functools.partial(_dw_stats_kernel, **static1),
        out_shape=(jax.ShapeDtypeStruct((N, C_in, H_out, W_out), io_dtype),
                   jax.ShapeDtypeStruct((N, 1, C_in), jnp.float32),
                   jax.ShapeDtypeStruct((N, C_in, C_in), jnp.float32)),
        grid=(steps,),
        in_specs=[x_spec, smem],
        out_specs=(pl.BlockSpec((bn, C_in, H_out, W_out),
                                lambda n: (n, 0, 0, 0)),
                   pl.BlockSpec((bn, 1, C_in), lambda n: (n, 0, 0)),
                   pl.BlockSpec((bn, C_in, C_in), lambda n: (n, 0, 0))),
        scratch_shapes=[pltpu.VMEM((C_in, Hp, Wp), jnp.float32),
                        pltpu.VMEM((KW, C_in, Hp, W_out), jnp.float32)],
        compiler_params=cparams,
    )(x_nchw, dw)

    # ---- Tiny XLA-side BN math: exact training-mode stats of y = PW @ z ------
    M = N * HW
    m = m_img[:, 0, :]                                 # (N, C_in) per-image means
    mean_z = jnp.mean(m, axis=0)                       # (C_in,)
    d = m - mean_z[None, :]
    ss = jnp.sum(c_img, axis=0) + HW * (d.T @ d)       # total centered SS of z
    cov_z = ss / M                                     # biased covariance
    mean_y = pw @ mean_z                               # (C_out,)
    var_y = jnp.einsum('oc,cd,od->o', pw, cov_z, pw)   # (C_out,) biased var of y
    inv = jax.lax.rsqrt(var_y + eps)
    scale = gamma.astype(jnp.float32) * inv
    shift = beta.astype(jnp.float32) - mean_y * scale
    pw_folded = pw * scale[:, None]                    # (C_out, C_in)

    # ---- Pass 2: BN-folded 1x1 conv + shift (lane-dense, HW on lanes) --------
    z_flat = z.reshape(N, C_in, HW)                    # free contiguous reshape
    static2 = dict(NB=bn, C_in=C_in, C_out=C_out)
    out = pl.pallas_call(
        functools.partial(_pointwise_kernel, **static2),
        out_shape=jax.ShapeDtypeStruct((N, C_out, HW), io_dtype),
        grid=(steps,),
        in_specs=[pl.BlockSpec((bn, C_in, HW), lambda n: (n, 0, 0)), smem, smem],
        out_specs=pl.BlockSpec((bn, C_out, HW), lambda n: (n, 0, 0)),
        compiler_params=cparams,
    )(z_flat, pw_folded, shift)
    return out.reshape(N, C_out, H_out, W_out)         # free contiguous reshape


def reference(x, dw_w, pw_w, gamma, beta, stride, padding, dilation, eps=1e-5):
    # Pure-JAX reference mirroring the PyTorch module (training-mode BN).
    C_in = x.shape[1]
    xr = jax.nn.relu(x)
    z = jax.lax.conv_general_dilated(
        xr, dw_w, window_strides=(stride, stride),
        padding=[(padding, padding), (padding, padding)],
        rhs_dilation=(dilation, dilation),
        dimension_numbers=("NCHW", "OIHW", "NCHW"),
        feature_group_count=C_in)
    y = jax.lax.conv_general_dilated(
        z, pw_w, window_strides=(1, 1), padding=[(0, 0), (0, 0)],
        dimension_numbers=("NCHW", "OIHW", "NCHW"))
    mean = jnp.mean(y, axis=(0, 2, 3), keepdims=True)
    var = jnp.var(y, axis=(0, 2, 3), keepdims=True)
    yhat = (y - mean) / jnp.sqrt(var + eps)
    return yhat * gamma.reshape(1, -1, 1, 1) + beta.reshape(1, -1, 1, 1)


if __name__ == "__main__":
    key = jax.random.PRNGKey(0)
    k1, k2, k3 = jax.random.split(key, 3)

    # DilConv(C_in=4, C_out=8, kernel_size=3, stride=1, padding=2, dilation=2)
    N, C_in, C_out, H, W = 2, 4, 8, 16, 16
    kernel_size, stride, padding, dilation = 3, 1, 2, 2

    x = jax.random.normal(k1, (N, C_in, H, W), jnp.float32)
    dw_w = 0.3 * jax.random.normal(k2, (C_in, 1, kernel_size, kernel_size),
                                   jnp.float32)
    pw_w = 0.3 * jax.random.normal(k3, (C_out, C_in, 1, 1), jnp.float32)
    gamma = jnp.ones((C_out,), jnp.float32)   # nn.BatchNorm2d affine defaults
    beta = jnp.zeros((C_out,), jnp.float32)

    out = dil_conv_forward(x, dw_w, pw_w, gamma, beta, stride=stride,
                           padding=padding, dilation=dilation)
    out = jax.block_until_ready(out)

    ref = reference(x, dw_w, pw_w, gamma, beta, stride, padding, dilation)
    assert out.shape == ref.shape == (N, C_out, H, W)
    max_err = float(jnp.max(jnp.abs(out - ref)))
    assert jnp.allclose(out, ref, atol=5e-4, rtol=5e-4), max_err
    print("KERNEL_OK")
</pallas_src>

<mosaic_0001>
module attributes {stable_mosaic.version = 11 : i64} {
  func.func @_dw_stats_kernel(%arg0: i32, %arg1: memref<1x4x16x16xf32, #tpu.memory_space<vmem>>, %arg2: memref<4x9xf32, #tpu.memory_space<smem>>, %arg3: memref<1x4x16x16xf32, #tpu.memory_space<vmem>>, %arg4: memref<1x1x4xf32, #tpu.memory_space<vmem>>, %arg5: memref<1x4x4xf32, #tpu.memory_space<vmem>>, %arg6: memref<4x20x20xf32, #tpu.memory_space<vmem>>, %arg7: memref<3x4x20x16xf32, #tpu.memory_space<vmem>>) attributes {dimension_semantics = [#tpu.dimension_semantics<parallel>], iteration_bounds = array<i64: 2>, scalar_prefetch = 0 : i64, scratch_operands = 2 : i64, tpu.core_type = #tpu.core_type<tc>, window_params = [{transform_indices = @transform_0, window_bounds = array<i64: 1, 4, 16, 16>}, {transform_indices = @transform_1, window_bounds = array<i64: 4, 9>}, {transform_indices = @transform_2, window_bounds = array<i64: 1, 4, 16, 16>}, {transform_indices = @transform_3, window_bounds = array<i64: 1, 1, 4>}, {transform_indices = @transform_4, window_bounds = array<i64: 1, 4, 4>}]} {
    %cst = arith.constant 0.000000e+00 : f32
    %0 = vector.broadcast %cst : f32 to vector<4x20x20xf32>
    %c0 = arith.constant 0 : index
    %c0_0 = arith.constant 0 : index
    %c0_1 = arith.constant 0 : index
    %1 = vector.load %arg6[%c0, %c0_0, %c0_1] : memref<4x20x20xf32, #tpu.memory_space<vmem>>, vector<4x20x20xf32>
    tpu.vector_store %arg6[%c0, %c0_0, %c0_1], %0 {strides = array<i32>} : memref<4x20x20xf32, #tpu.memory_space<vmem>>, vector<4x20x20xf32>,
    %c0_2 = arith.constant 0 : index
    %c0_3 = arith.constant 0 : index
    %c0_4 = arith.constant 0 : index
    %c0_5 = arith.constant 0 : index
    %2 = vector.load %arg1[%c0_2, %c0_3, %c0_4, %c0_5] : memref<1x4x16x16xf32, #tpu.memory_space<vmem>>, vector<1x4x16x16xf32>
    %3 = vector.shape_cast %2 : vector<1x4x16x16xf32> to vector<4x16x16xf32>
    %cst_6 = arith.constant 0.000000e+00 : f32
    %4 = vector.broadcast %cst_6 : f32 to vector<4x16x16xf32>
    %5 = arith.maximumf %3, %4 : vector<4x16x16xf32>
    %c0_7 = arith.constant 0 : index
    %c2 = arith.constant 2 : index
    %c2_8 = arith.constant 2 : index
    %6 = vector.load %arg6[%c0_7, %c2, %c2_8] : memref<4x20x20xf32, #tpu.memory_space<vmem>>, vector<4x16x16xf32>
    tpu.vector_store %arg6[%c0_7, %c2, %c2_8], %5 {strides = array<i32>} : memref<4x20x20xf32, #tpu.memory_space<vmem>>, vector<4x16x16xf32>,
    %c0_9 = arith.constant 0 : index
    %c0_10 = arith.constant 0 : index
    %c0_11 = arith.constant 0 : index
    %7 = vector.load %arg6[%c0_9, %c0_10, %c0_11] : memref<4x20x20xf32, #tpu.memory_space<vmem>>, vector<1x20x16xf32>
    %8 = vector.shape_cast %7 : vector<1x20x16xf32> to vector<20x16xf32>
    %c0_12 = arith.constant 0 : index
    %c0_13 = arith.constant 0 : index
    %c0_14 = arith.constant 0 : index
    %c0_15 = arith.constant 0 : index
    %9 = vector.load %arg7[%c0_12, %c0_13, %c0_14, %c0_15] : memref<3x4x20x16xf32, #tpu.memory_space<vmem>>, vector<1x1x20x16xf32>
    %10 = vector.shape_cast %9 : vector<1x1x20x16xf32> to vector<20x16xf32>
    %11 = vector.shape_cast %8 : vector<20x16xf32> to vector<1x1x20x16xf32>
    tpu.vector_store %arg7[%c0_12, %c0_13, %c0_14, %c0_15], %11 {strides = array<i32>} : memref<3x4x20x16xf32, #tpu.memory_space<vmem>>, vector<1x1x20x16xf32>,
    %c1 = arith.constant 1 : index
    %c0_16 = arith.constant 0 : index
    %c0_17 = arith.constant 0 : index
    %12 = vector.load %arg6[%c1, %c0_16, %c0_17] : memref<4x20x20xf32, #tpu.memory_space<vmem>>, vector<1x20x16xf32>
    %13 = vector.shape_cast %12 : vector<1x20x16xf32> to vector<20x16xf32>
    %c0_18 = arith.constant 0 : index
    %c1_19 = arith.constant 1 : index
    %c0_20 = arith.constant 0 : index
    %c0_21 = arith.constant 0 : index
    %14 = vector.load %arg7[%c0_18, %c1_19, %c0_20, %c0_21] : memref<3x4x20x16xf32, #tpu.memory_space<vmem>>, vector<1x1x20x16xf32>
    %15 = vector.shape_cast %14 : vector<1x1x20x16xf32> to vector<20x16xf32>
    %16 = vector.shape_cast %13 : vector<20x16xf32> to vector<1x1x20x16xf32>
    tpu.vector_store %arg7[%c0_18, %c1_19, %c0_20, %c0_21], %16 {strides = array<i32>} : memref<3x4x20x16xf32, #tpu.memory_space<vmem>>, vector<1x1x20x16xf32>,
    %c2_22 = arith.constant 2 : index
    %c0_23 = arith.constant 0 : index
    %c0_24 = arith.constant 0 : index
    %17 = vector.load %arg6[%c2_22, %c0_23, %c0_24] : memref<4x20x20xf32, #tpu.memory_space<vmem>>, vector<1x20x16xf32>
    %18 = vector.shape_cast %17 : vector<1x20x16xf32> to vector<20x16xf32>
    %c0_25 = arith.constant 0 : index
    %c2_26 = arith.constant 2 : index
    %c0_27 = arith.constant 0 : index
    %c0_28 = arith.constant 0 : index
    %19 = vector.load %arg7[%c0_25, %c2_26, %c0_27, %c0_28] : memref<3x4x20x16xf32, #tpu.memory_space<vmem>>, vector<1x1x20x16xf32>
    %20 = vector.shape_cast %19 : vector<1x1x20x16xf32> to vector<20x16xf32>
    %21 = vector.shape_cast %18 : vector<20x16xf32> to vector<1x1x20x16xf32>
    tpu.vector_store %arg7[%c0_25, %c2_26, %c0_27, %c0_28], %21 {strides = array<i32>} : memref<3x4x20x16xf32, #tpu.memory_space<vmem>>, vector<1x1x20x16xf32>,
    %c3 = arith.constant 3 : index
    %c0_29 = arith.constant 0 : index
    %c0_30 = arith.constant 0 : index
    %22 = vector.load %arg6[%c3, %c0_29, %c0_30] : memref<4x20x20xf32, #tpu.memory_space<vmem>>, vector<1x20x16xf32>
    %23 = vector.shape_cast %22 : vector<1x20x16xf32> to vector<20x16xf32>
    %c0_31 = arith.constant 0 : index
    %c3_32 = arith.constant 3 : index
    %c0_33 = arith.constant 0 : index
    %c0_34 = arith.constant 0 : index
    %24 = vector.load %arg7[%c0_31, %c3_32, %c0_33, %c0_34] : memref<3x4x20x16xf32, #tpu.memory_space<vmem>>, vector<1x1x20x16xf32>
    %25 = vector.shape_cast %24 : vector<1x1x20x16xf32> to vector<20x16xf32>
    %26 = vector.shape_cast %23 : vector<20x16xf32> to vector<1x1x20x16xf32>
    tpu.vector_store %arg7[%c0_31, %c3_32, %c0_33, %c0_34], %26 {strides = array<i32>} : memref<3x4x20x16xf32, #tpu.memory_space<vmem>>, vector<1x1x20x16xf32>,
    %c0_35 = arith.constant 0 : index
    %c0_36 = arith.constant 0 : index
    %c2_37 = arith.constant 2 : index
    %27 = vector.load %arg6[%c0_35, %c0_36, %c2_37] : memref<4x20x20xf32, #tpu.memory_space<vmem>>, vector<1x20x16xf32>
    %28 = vector.shape_cast %27 : vector<1x20x16xf32> to vector<20x16xf32>
    %c1_38 = arith.constant 1 : index
    %c0_39 = arith.constant 0 : index
    %c0_40 = arith.constant 0 : index
    %c0_41 = arith.constant 0 : index
    %29 = vector.load %arg7[%c1_38, %c0_39, %c0_40, %c0_41] : memref<3x4x20x16xf32, #tpu.memory_space<vmem>>, vector<1x1x20x16xf32>
    %30 = vector.shape_cast %29 : vector<1x1x20x16xf32> to vector<20x16xf32>
    %31 = vector.shape_cast %28 : vector<20x16xf32> to vector<1x1x20x16xf32>
    tpu.vector_store %arg7[%c1_38, %c0_39, %c0_40, %c0_41], %31 {strides = array<i32>} : memref<3x4x20x16xf32, #tpu.memory_space<vmem>>, vector<1x1x20x16xf32>,
    %c1_42 = arith.constant 1 : index
    %c0_43 = arith.constant 0 : index
    %c2_44 = arith.constant 2 : index
    %32 = vector.load %arg6[%c1_42, %c0_43, %c2_44] : memref<4x20x20xf32, #tpu.memory_space<vmem>>, vector<1x20x16xf32>
    %33 = vector.shape_cast %32 : vector<1x20x16xf32> to vector<20x16xf32>
    %c1_45 = arith.constant 1 : index
    %c1_46 = arith.constant 1 : index
    %c0_47 = arith.constant 0 : index
    %c0_48 = arith.constant 0 : index
    %34 = vector.load %arg7[%c1_45, %c1_46, %c0_47, %c0_48] : memref<3x4x20x16xf32, #tpu.memory_space<vmem>>, vector<1x1x20x16xf32>
    %35 = vector.shape_cast %34 : vector<1x1x20x16xf32> to vector<20x16xf32>
    %36 = vector.shape_cast %33 : vector<20x16xf32> to vector<1x1x20x16xf32>
    tpu.vector_store %arg7[%c1_45, %c1_46, %c0_47, %c0_48], %36 {strides = array<i32>} : memref<3x4x20x16xf32, #tpu.memory_space<vmem>>, vector<1x1x20x16xf32>,
    %c2_49 = arith.constant 2 : index
    %c0_50 = arith.constant 0 : index
    %c2_51 = arith.constant 2 : index
    %37 = vector.load %arg6[%c2_49, %c0_50, %c2_51] : memref<4x20x20xf32, #tpu.memory_space<vmem>>, vector<1x20x16xf32>
    %38 = vector.shape_cast %37 : vector<1x20x16xf32> to vector<20x16xf32>
    %c1_52 = arith.constant 1 : index
    %c2_53 = arith.constant 2 : index
    %c0_54 = arith.constant 0 : index
    %c0_55 = arith.constant 0 : index
    %39 = vector.load %arg7[%c1_52, %c2_53, %c0_54, %c0_55] : memref<3x4x20x16xf32, #tpu.memory_space<vmem>>, vector<1x1x20x16xf32>
    %40 = vector.shape_cast %39 : vector<1x1x20x16xf32> to vector<20x16xf32>
    %41 = vector.shape_cast %38 : vector<20x16xf32> to vector<1x1x20x16xf32>
    tpu.vector_store %arg7[%c1_52, %c2_53, %c0_54, %c0_55], %41 {strides = array<i32>} : memref<3x4x20x16xf32, #tpu.memory_space<vmem>>, vector<1x1x20x16xf32>,
    %c3_56 = arith.constant 3 : index
    %c0_57 = arith.constant 0 : index
    %c2_58 = arith.constant 2 : index
    %42 = vector.load %arg6[%c3_56, %c0_57, %c2_58] : memref<4x20x20xf32, #tpu.memory_space<vmem>>, vector<1x20x16xf32>
    %43 = vector.shape_cast %42 : vector<1x20x16xf32> to vector<20x16xf32>
    %c1_59 = arith.constant 1 : index
    %c3_60 = arith.constant 3 : index
    %c0_61 = arith.constant 0 : index
    %c0_62 = arith.constant 0 : index
    %44 = vector.load %arg7[%c1_59, %c3_60, %c0_61, %c0_62] : memref<3x4x20x16xf32, #tpu.memory_space<vmem>>, vector<1x1x20x16xf32>
    %45 = vector.shape_cast %44 : vector<1x1x20x16xf32> to vector<20x16xf32>
    %46 = vector.shape_cast %43 : vector<20x16xf32> to vector<1x1x20x16xf32>
    tpu.vector_store %arg7[%c1_59, %c3_60, %c0_61, %c0_62], %46 {strides = array<i32>} : memref<3x4x20x16xf32, #tpu.memory_space<vmem>>, vector<1x1x20x16xf32>,
    %c0_63 = arith.constant 0 : index
    %c0_64 = arith.constant 0 : index
    %c4 = arith.constant 4 : index
    %47 = vector.load %arg6[%c0_63, %c0_64, %c4] : memref<4x20x20xf32, #tpu.memory_space<vmem>>, vector<1x20x16xf32>
    %48 = vector.shape_cast %47 : vector<1x20x16xf32> to vector<20x16xf32>
    %c2_65 = arith.constant 2 : index
    %c0_66 = arith.constant 0 : index
    %c0_67 = arith.constant 0 : index
    %c0_68 = arith.constant 0 : index
    %49 = vector.load %arg7[%c2_65, %c0_66, %c0_67, %c0_68] : memref<3x4x20x16xf32, #tpu.memory_space<vmem>>, vector<1x1x20x16xf32>
    %50 = vector.shape_cast %49 : vector<1x1x20x16xf32> to vector<20x16xf32>
    %51 = vector.shape_cast %48 : vector<20x16xf32> to vector<1x1x20x16xf32>
    tpu.vector_store %arg7[%c2_65, %c0_66, %c0_67, %c0_68], %51 {strides = array<i32>} : memref<3x4x20x16xf32, #tpu.memory_space<vmem>>, vector<1x1x20x16xf32>,
    %c1_69 = arith.constant 1 : index
    %c0_70 = arith.constant 0 : index
    %c4_71 = arith.constant 4 : index
    %52 = vector.load %arg6[%c1_69, %c0_70, %c4_71] : memref<4x20x20xf32, #tpu.memory_space<vmem>>, vector<1x20x16xf32>
    %53 = vector.shape_cast %52 : vector<1x20x16xf32> to vector<20x16xf32>
    %c2_72 = arith.constant 2 : index
    %c1_73 = arith.constant 1 : index
    %c0_74 = arith.constant 0 : index
    %c0_75 = arith.constant 0 : index
    %54 = vector.load %arg7[%c2_72, %c1_73, %c0_74, %c0_75] : memref<3x4x20x16xf32, #tpu.memory_space<vmem>>, vector<1x1x20x16xf32>
    %55 = vector.shape_cast %54 : vector<1x1x20x16xf32> to vector<20x16xf32>
    %56 = vector.shape_cast %53 : vector<20x16xf32> to vector<1x1x20x16xf32>
    tpu.vector_store %arg7[%c2_72, %c1_73, %c0_74, %c0_75], %56 {strides = array<i32>} : memref<3x4x20x16xf32, #tpu.memory_space<vmem>>, vector<1x1x20x16xf32>,
    %c2_76 = arith.constant 2 : index
    %c0_77 = arith.constant 0 : index
    %c4_78 = arith.constant 4 : index
    %57 = vector.load %arg6[%c2_76, %c0_77, %c4_78] : memref<4x20x20xf32, #tpu.memory_space<vmem>>, vector<1x20x16xf32>
    %58 = vector.shape_cast %57 : vector<1x20x16xf32> to vector<20x16xf32>
    %c2_79 = arith.constant 2 : index
    %c2_80 = arith.constant 2 : index
    %c0_81 = arith.constant 0 : index
    %c0_82 = arith.constant 0 : index
    %59 = vector.load %arg7[%c2_79, %c2_80, %c0_81, %c0_82] : memref<3x4x20x16xf32, #tpu.memory_space<vmem>>, vector<1x1x20x16xf32>
    %60 = vector.shape_cast %59 : vector<1x1x20x16xf32> to vector<20x16xf32>
    %61 = vector.shape_cast %58 : vector<20x16xf32> to vector<1x1x20x16xf32>
    tpu.vector_store %arg7[%c2_79, %c2_80, %c0_81, %c0_82], %61 {strides = array<i32>} : memref<3x4x20x16xf32, #tpu.memory_space<vmem>>, vector<1x1x20x16xf32>,
    %c3_83 = arith.constant 3 : index
    %c0_84 = arith.constant 0 : index
    %c4_85 = arith.constant 4 : index
    %62 = vector.load %arg6[%c3_83, %c0_84, %c4_85] : memref<4x20x20xf32, #tpu.memory_space<vmem>>, vector<1x20x16xf32>
    %63 = vector.shape_cast %62 : vector<1x20x16xf32> to vector<20x16xf32>
    %c2_86 = arith.constant 2 : index
    %c3_87 = arith.constant 3 : index
    %c0_88 = arith.constant 0 : index
    %c0_89 = arith.constant 0 : index
    %64 = vector.load %arg7[%c2_86, %c3_87, %c0_88, %c0_89] : memref<3x4x20x16xf32, #tpu.memory_space<vmem>>, vector<1x1x20x16xf32>
    %65 = vector.shape_cast %64 : vector<1x1x20x16xf32> to vector<20x16xf32>
    %66 = vector.shape_cast %63 : vector<20x16xf32> to vector<1x1x20x16xf32>
    tpu.vector_store %arg7[%c2_86, %c3_87, %c0_88, %c0_89], %66 {strides = array<i32>} : memref<3x4x20x16xf32, #tpu.memory_space<vmem>>, vector<1x1x20x16xf32>,
    %cst_90 = arith.constant 0.000000e+00 : f32
    %67 = vector.broadcast %cst_90 : f32 to vector<16x16xf32>
    %c0_91 = arith.constant 0 : index
    %c0_92 = arith.constant 0 : index
    %c0_93 = arith.constant 0 : index
    %c0_94 = arith.constant 0 : index
    %68 = vector.load %arg7[%c0_91, %c0_92, %c0_93, %c0_94] : memref<3x4x20x16xf32, #tpu.memory_space<vmem>>, vector<1x1x16x16xf32>
    %69 = vector.shape_cast %68 : vector<1x1x16x16xf32> to vector<16x16xf32>
    %c0_95 = arith.constant 0 : index
    %c0_96 = arith.constant 0 : index
    %70 = memref.load %arg2[%c0_95, %c0_96] : memref<4x9xf32, #tpu.memory_space<smem>>
    %71 = vector.broadcast %70 : f32 to vector<16x16xf32>
    %72 = arith.mulf %69, %71 : vector<16x16xf32>
    %73 = arith.addf %67, %72 : vector<16x16xf32>
    %c1_97 = arith.constant 1 : index
    %c0_98 = arith.constant 0 : index
    %c0_99 = arith.constant 0 : index
    %c0_100 = arith.constant 0 : index
    %74 = vector.load %arg7[%c1_97, %c0_98, %c0_99, %c0_100] : memref<3x4x20x16xf32, #tpu.memory_space<vmem>>, vector<1x1x16x16xf32>
    %75 = vector.shape_cast %74 : vector<1x1x16x16xf32> to vector<16x16xf32>
    %c0_101 = arith.constant 0 : index
    %c1_102 = arith.constant 1 : index
    %76 = memref.load %arg2[%c0_101, %c1_102] : memref<4x9xf32, #tpu.memory_space<smem>>
    %77 = vector.broadcast %76 : f32 to vector<16x16xf32>
    %78 = arith.mulf %75, %77 : vector<16x16xf32>
    %79 = arith.addf %73, %78 : vector<16x16xf32>
    %c2_103 = arith.constant 2 : index
    %c0_104 = arith.constant 0 : index
    %c0_105 = arith.constant 0 : index
    %c0_106 = arith.constant 0 : index
    %80 = vector.load %arg7[%c2_103, %c0_104, %c0_105, %c0_106] : memref<3x4x20x16xf32, #tpu.memory_space<vmem>>, vector<1x1x16x16xf32>
    %81 = vector.shape_cast %80 : vector<1x1x16x16xf32> to vector<16x16xf32>
    %c0_107 = arith.constant 0 : index
    %c2_108 = arith.constant 2 : index
    %82 = memref.load %arg2[%c0_107, %c2_108] : memref<4x9xf32, #tpu.memory_space<smem>>
    %83 = vector.broadcast %82 : f32 to vector<16x16xf32>
    %84 = arith.mulf %81, %83 : vector<16x16xf32>
    %85 = arith.addf %79, %84 : vector<16x16xf32>
    %c0_109 = arith.constant 0 : index
    %c0_110 = arith.constant 0 : index
    %c2_111 = arith.constant 2 : index
    %c0_112 = arith.constant 0 : index
    %86 = vector.load %arg7[%c0_109, %c0_110, %c2_111, %c0_112] : memref<3x4x20x16xf32, #tpu.memory_space<vmem>>, vector<1x1x16x16xf32>
    %87 = vector.shape_cast %86 : vector<1x1x16x16xf32> to vector<16x16xf32>
    %c0_113 = arith.constant 0 : index
    %c3_114 = arith.constant 3 : index
    %88 = memref.load %arg2[%c0_113, %c3_114] : memref<4x9xf32, #tpu.memory_space<smem>>
    %89 = vector.broadcast %88 : f32 to vector<16x16xf32>
    %90 = arith.mulf %87, %89 : vector<16x16xf32>
    %91 = arith.addf %85, %90 : vector<16x16xf32>
    %c1_115 = arith.constant 1 : index
    %c0_116 = arith.constant 0 : index
    %c2_117 = arith.constant 2 : index
    %c0_118 = arith.constant 0 : index
    %92 = vector.load %arg7[%c1_115, %c0_116, %c2_117, %c0_118] : memref<3x4x20x16xf32, #tpu.memory_space<vmem>>, vector<1x1x16x16xf32>
    %93 = vector.shape_cast %92 : vector<1x1x16x16xf32> to vector<16x16xf32>
    %c0_119 = arith.constant 0 : index
    %c4_120 = arith.constant 4 : index
    %94 = memref.load %arg2[%c0_119, %c4_120] : memref<4x9xf32, #tpu.memory_space<smem>>
    %95 = vector.broadcast %94 : f32 to vector<16x16xf32>
    %96 = arith.mulf %93, %95 : vector<16x16xf32>
    %97 = arith.addf %91, %96 : vector<16x16xf32>
    %c2_121 = arith.constant 2 : index
    %c0_122 = arith.constant 0 : index
    %c2_123 = arith.constant 2 : index
    %c0_124 = arith.constant 0 : index
    %98 = vector.load %arg7[%c2_121, %c0_122, %c2_123, %c0_124] : memref<3x4x20x16xf32, #tpu.memory_space<vmem>>, vector<1x1x16x16xf32>
    %99 = vector.shape_cast %98 : vector<1x1x16x16xf32> to vector<16x16xf32>
    %c0_125 = arith.constant 0 : index
    %c5 = arith.constant 5 : index
    %100 = memref.load %arg2[%c0_125, %c5] : memref<4x9xf32, #tpu.memory_space<smem>>
    %101 = vector.broadcast %100 : f32 to vector<16x16xf32>
    %102 = arith.mulf %99, %101 : vector<16x16xf32>
    %103 = arith.addf %97, %102 : vector<16x16xf32>
    %c0_126 = arith.constant 0 : index
    %c0_127 = arith.constant 0 : index
    %c4_128 = arith.constant 4 : index
    %c0_129 = arith.constant 0 : index
    %104 = vector.load %arg7[%c0_126, %c0_127, %c4_128, %c0_129] : memref<3x4x20x16xf32, #tpu.memory_space<vmem>>, vector<1x1x16x16xf32>
    %105 = vector.shape_cast %104 : vector<1x1x16x16xf32> to vector<16x16xf32>
    %c0_130 = arith.constant 0 : index
    %c6 = arith.constant 6 : index
    %106 = memref.load %arg2[%c0_130, %c6] : memref<4x9xf32, #tpu.memory_space<smem>>
    %107 = vector.broadcast %106 : f32 to vector<16x16xf32>
    %108 = arith.mulf %105, %107 : vector<16x16xf32>
    %109 = arith.addf %103, %108 : vector<16x16xf32>
    %c1_131 = arith.constant 1 : index
    %c0_132 = arith.constant 0 : index
    %c4_133 = arith.constant 4 : index
    %c0_134 = arith.constant 0 : index
    %110 = vector.load %arg7[%c1_131, %c0_132, %c4_133, %c0_134] : memref<3x4x20x16xf32, #tpu.memory_space<vmem>>, vector<1x1x16x16xf32>
    %111 = vector.shape_cast %110 : vector<1x1x16x16xf32> to vector<16x16xf32>
    %c0_135 = arith.constant 0 : index
    %c7 = arith.constant 7 : index
    %112 = memref.load %arg2[%c0_135, %c7] : memref<4x9xf32, #tpu.memory_space<smem>>
    %113 = vector.broadcast %112 : f32 to vector<16x16xf32>
    %114 = arith.mulf %111, %113 : vector<16x16xf32>
    %115 = arith.addf %109, %114 : vector<16x16xf32>
    %c2_136 = arith.constant 2 : index
    %c0_137 = arith.constant 0 : index
    %c4_138 = arith.constant 4 : index
    %c0_139 = arith.constant 0 : index
    %116 = vector.load %arg7[%c2_136, %c0_137, %c4_138, %c0_139] : memref<3x4x20x16xf32, #tpu.memory_space<vmem>>, vector<1x1x16x16xf32>
    %117 = vector.shape_cast %116 : vector<1x1x16x16xf32> to vector<16x16xf32>
    %c0_140 = arith.constant 0 : index
    %c8 = arith.constant 8 : index
    %118 = memref.load %arg2[%c0_140, %c8] : memref<4x9xf32, #tpu.memory_space<smem>>
    %119 = vector.broadcast %118 : f32 to vector<16x16xf32>
    %120 = arith.mulf %117, %119 : vector<16x16xf32>
    %121 = arith.addf %115, %120 : vector<16x16xf32>
    %c0_141 = arith.constant 0 : index
    %c0_142 = arith.constant 0 : index
    %c0_143 = arith.constant 0 : index
    %c0_144 = arith.constant 0 : index
    %122 = vector.load %arg3[%c0_141, %c0_142, %c0_143, %c0_144] : memref<1x4x16x16xf32, #tpu.memory_space<vmem>>, vector<1x1x16x16xf32>
    %123 = vector.shape_cast %122 : vector<1x1x16x16xf32> to vector<16x16xf32>
    %124 = vector.shape_cast %121 : vector<16x16xf32> to vector<1x1x16x16xf32>
    tpu.vector_store %arg3[%c0_141, %c0_142, %c0_143, %c0_144], %124 {strides = array<i32>} : memref<1x4x16x16xf32, #tpu.memory_space<vmem>>, vector<1x1x16x16xf32>,
    %cst_145 = arith.constant dense<0.000000e+00> : vector<16xf32>
    %125 = vector.multi_reduction <add>, %121, %cst_145 [1] : vector<16x16xf32> to vector<16xf32>
    %126 = vector.shape_cast %125 : vector<16xf32> to vector<16x1xf32>
    %cst_146 = arith.constant dense<0.000000e+00> : vector<1xf32>
    %127 = vector.multi_reduction <add>, %126, %cst_146 [0] : vector<16x1xf32> to vector<1xf32>
    %128 = vector.shape_cast %127 : vector<1xf32> to vector<1x1xf32>
    %cst_147 = arith.constant 3.906250e-03 : f32
    %129 = vector.broadcast %cst_147 : f32 to vector<1x1xf32>
    %130 = arith.mulf %128, %129 : vector<1x1xf32>
    %131 = vector.broadcast %130 : vector<1x1xf32> to vector<16x16xf32>
    %132 = arith.subf %121, %131 : vector<16x16xf32>
    %cst_148 = arith.constant 0.000000e+00 : f32
    %133 = vector.broadcast %cst_148 : f32 to vector<16x16xf32>
    %c0_149 = arith.constant 0 : index
    %c1_150 = arith.constant 1 : index
    %c0_151 = arith.constant 0 : index
    %c0_152 = arith.constant 0 : index
    %134 = vector.load %arg7[%c0_149, %c1_150, %c0_151, %c0_152] : memref<3x4x20x16xf32, #tpu.memory_space<vmem>>, vector<1x1x16x16xf32>
    %135 = vector.shape_cast %134 : vector<1x1x16x16xf32> to vector<16x16xf32>
    %c1_153 = arith.constant 1 : index
    %c0_154 = arith.constant 0 : index
    %136 = memref.load %arg2[%c1_153, %c0_154] : memref<4x9xf32, #tpu.memory_space<smem>>
    %137 = vector.broadcast %136 : f32 to vector<16x16xf32>
    %138 = arith.mulf %135, %137 : vector<16x16xf32>
    %139 = arith.addf %133, %138 : vector<16x16xf32>
    %c1_155 = arith.constant 1 : index
    %c1_156 = arith.constant 1 : index
    %c0_157 = arith.constant 0 : index
    %c0_158 = arith.constant 0 : index
    %140 = vector.load %arg7[%c1_155, %c1_156, %c0_157, %c0_158] : memref<3x4x20x16xf32, #tpu.memory_space<vmem>>, vector<1x1x16x16xf32>
    %141 = vector.shape_cast %140 : vector<1x1x16x16xf32> to vector<16x16xf32>
    %c1_159 = arith.constant 1 : index
    %c1_160 = arith.constant 1 : index
    %142 = memref.load %arg2[%c1_159, %c1_160] : memref<4x9xf32, #tpu.memory_space<smem>>
    %143 = vector.broadcast %142 : f32 to vector<16x16xf32>
    %144 = arith.mulf %141, %143 : vector<16x16xf32>
    %145 = arith.addf %139, %144 : vector<16x16xf32>
    %c2_161 = arith.constant 2 : index
    %c1_162 = arith.constant 1 : index
    %c0_163 = arith.constant 0 : index
    %c0_164 = arith.constant 0 : index
    %146 = vector.load %arg7[%c2_161, %c1_162, %c0_163, %c0_164] : memref<3x4x20x16xf32, #tpu.memory_space<vmem>>, vector<1x1x16x16xf32>
    %147 = vector.shape_cast %146 : vector<1x1x16x16xf32> to vector<16x16xf32>
    %c1_165 = arith.constant 1 : index
    %c2_166 = arith.constant 2 : index
    %148 = memref.load %arg2[%c1_165, %c2_166] : memref<4x9xf32, #tpu.memory_space<smem>>
    %149 = vector.broadcast %148 : f32 to vector<16x16xf32>
    %150 = arith.mulf %147, %149 : vector<16x16xf32>
    %151 = arith.addf %145, %150 : vector<16x16xf32>
    %c0_167 = arith.constant 0 : index
    %c1_168 = arith.constant 1 : index
    %c2_169 = arith.constant 2 : index
    %c0_170 = arith.constant 0 : index
    %152 = vector.load %arg7[%c0_167, %c1_168, %c2_169, %c0_170] : memref<3x4x20x16xf32, #tpu.memory_space<vmem>>, vector<1x1x16x16xf32>
    %153 = vector.shape_cast %152 : vector<1x1x16x16xf32> to vector<16x16xf32>
    %c1_171 = arith.constant 1 : index
    %c3_172 = arith.constant 3 : index
    %154 = memref.load %arg2[%c1_171, %c3_172] : memref<4x9xf32, #tpu.memory_space<smem>>
    %155 = vector.broadcast %154 : f32 to vector<16x16xf32>
    %156 = arith.mulf %153, %155 : vector<16x16xf32>
    %157 = arith.addf %151, %156 : vector<16x16xf32>
    %c1_173 = arith.constant 1 : index
    %c1_174 = arith.constant 1 : index
    %c2_175 = arith.constant 2 : index
    %c0_176 = arith.constant 0 : index
    %158 = vector.load %arg7[%c1_173, %c1_174, %c2_175, %c0_176] : memref<3x4x20x16xf32, #tpu.memory_space<vmem>>, vector<1x1x16x16xf32>
    %159 = vector.shape_cast %158 : vector<1x1x16x16xf32> to vector<16x16xf32>
    %c1_177 = arith.constant 1 : index
    %c4_178 = arith.constant 4 : index
    %160 = memref.load %arg2[%c1_177, %c4_178] : memref<4x9xf32, #tpu.memory_space<smem>>
    %161 = vector.broadcast %160 : f32 to vector<16x16xf32>
    %162 = arith.mulf %159, %161 : vector<16x16xf32>
    %163 = arith.addf %157, %162 : vector<16x16xf32>
    %c2_179 = arith.constant 2 : index
    %c1_180 = arith.constant 1 : index
    %c2_181 = arith.constant 2 : index
    %c0_182 = arith.constant 0 : index
    %164 = vector.load %arg7[%c2_179, %c1_180, %c2_181, %c0_182] : memref<3x4x20x16xf32, #tpu.memory_space<vmem>>, vector<1x1x16x16xf32>
    %165 = vector.shape_cast %164 : vector<1x1x16x16xf32> to vector<16x16xf32>
    %c1_183 = arith.constant 1 : index
    %c5_184 = arith.constant 5 : index
    %166 = memref.load %arg2[%c1_183, %c5_184] : memref<4x9xf32, #tpu.memory_space<smem>>
    %167 = vector.broadcast %166 : f32 to vector<16x16xf32>
    %168 = arith.mulf %165, %167 : vector<16x16xf32>
    %169 = arith.addf %163, %168 : vector<16x16xf32>
    %c0_185 = arith.constant 0 : index
    %c1_186 = arith.constant 1 : index
    %c4_187 = arith.constant 4 : index
    %c0_188 = arith.constant 0 : index
    %170 = vector.load %arg7[%c0_185, %c1_186, %c4_187, %c0_188] : memref<3x4x20x16xf32, #tpu.memory_space<vmem>>, vector<1x1x16x16xf32>
    %171 = vector.shape_cast %170 : vector<1x1x16x16xf32> to vector<16x16xf32>
    %c1_189 = arith.constant 1 : index
    %c6_190 = arith.constant 6 : index
    %172 = memref.load %arg2[%c1_189, %c6_190] : memref<4x9xf32, #tpu.memory_space<smem>>
    %173 = vector.broadcast %172 : f32 to vector<16x16xf32>
    %174 = arith.mulf %171, %173 : vector<16x16xf32>
    %175 = arith.addf %169, %174 : vector<16x16xf32>
    %c1_191 = arith.constant 1 : index
    %c1_192 = arith.constant 1 : index
    %c4_193 = arith.constant 4 : index
    %c0_194 = arith.constant 0 : index
    %176 = vector.load %arg7[%c1_191, %c1_192, %c4_193, %c0_194] : memref<3x4x20x16xf32, #tpu.memory_space<vmem>>, vector<1x1x16x16xf32>
    %177 = vector.shape_cast %176 : vector<1x1x16x16xf32> to vector<16x16xf32>
    %c1_195 = arith.constant 1 : index
    %c7_196 = arith.constant 7 : index
    %178 = memref.load %arg2[%c1_195, %c7_196] : memref<4x9xf32, #tpu.memory_space<smem>>
    %179 = vector.broadcast %178 : f32 to vector<16x16xf32>
    %180 = arith.mulf %177, %179 : vector<16x16xf32>
    %181 = arith.addf %175, %180 : vector<16x16xf32>
    %c2_197 = arith.constant 2 : index
    %c1_198 = arith.constant 1 : index
    %c4_199 = arith.constant 4 : index
    %c0_200 = arith.constant 0 : index
    %182 = vector.load %arg7[%c2_197, %c1_198, %c4_199, %c0_200] : memref<3x4x20x16xf32, #tpu.memory_space<vmem>>, vector<1x1x16x16xf32>
    %183 = vector.shape_cast %182 : vector<1x1x16x16xf32> to vector<16x16xf32>
    %c1_201 = arith.constant 1 : index
    %c8_202 = arith.constant 8 : index
    %184 = memref.load %arg2[%c1_201, %c8_202] : memref<4x9xf32, #tpu.memory_space<smem>>
    %185 = vector.broadcast %184 : f32 to vector<16x16xf32>
    %186 = arith.mulf %183, %185 : vector<16x16xf32>
    %187 = arith.addf %181, %186 : vector<16x16xf32>
    %c0_203 = arith.constant 0 : index
    %c1_204 = arith.constant 1 : index
    %c0_205 = arith.constant 0 : index
    %c0_206 = arith.constant 0 : index
    %188 = vector.load %arg3[%c0_203, %c1_204, %c0_205, %c0_206] : memref<1x4x16x16xf32, #tpu.memory_space<vmem>>, vector<1x1x16x16xf32>
    %189 = vector.shape_cast %188 : vector<1x1x16x16xf32> to vector<16x16xf32>
    %190 = vector.shape_cast %187 : vector<16x16xf32> to vector<1x1x16x16xf32>
    tpu.vector_store %arg3[%c0_203, %c1_204, %c0_205, %c0_206], %190 {strides = array<i32>} : memref<1x4x16x16xf32, #tpu.memory_space<vmem>>, vector<1x1x16x16xf32>,
    %cst_207 = arith.constant dense<0.000000e+00> : vector<16xf32>
    %191 = vector.multi_reduction <add>, %187, %cst_207 [1] : vector<16x16xf32> to vector<16xf32>
    %192 = vector.shape_cast %191 : vector<16xf32> to vector<16x1xf32>
    %cst_208 = arith.constant dense<0.000000e+00> : vector<1xf32>
    %193 = vector.multi_reduction <add>, %192, %cst_208 [0] : vector<16x1xf32> to vector<1xf32>
    %194 = vector.shape_cast %193 : vector<1xf32> to vector<1x1xf32>
    %cst_209 = arith.constant 3.906250e-03 : f32
    %195 = vector.broadcast %cst_209 : f32 to vector<1x1xf32>
    %196 = arith.mulf %194, %195 : vector<1x1xf32>
    %197 = vector.broadcast %196 : vector<1x1xf32> to vector<16x16xf32>
    %198 = arith.subf %187, %197 : vector<16x16xf32>
    %cst_210 = arith.constant 0.000000e+00 : f32
    %199 = vector.broadcast %cst_210 : f32 to vector<16x16xf32>
    %c0_211 = arith.constant 0 : index
    %c2_212 = arith.constant 2 : index
    %c0_213 = arith.constant 0 : index
    %c0_214 = arith.constant 0 : index
    %200 = vector.load %arg7[%c0_211, %c2_212, %c0_213, %c0_214] : memref<3x4x20x16xf32, #tpu.memory_space<vmem>>, vector<1x1x16x16xf32>
    %201 = vector.shape_cast %200 : vector<1x1x16x16xf32> to vector<16x16xf32>
    %c2_215 = arith.constant 2 : index
    %c0_216 = arith.constant 0 : index
    %202 = memref.load %arg2[%c2_215, %c0_216] : memref<4x9xf32, #tpu.memory_space<smem>>
    %203 = vector.broadcast %202 : f32 to vector<16x16xf32>
    %204 = arith.mulf %201, %203 : vector<16x16xf32>
    %205 = arith.addf %199, %204 : vector<16x16xf32>
    %c1_217 = arith.constant 1 : index
    %c2_218 = arith.constant 2 : index
    %c0_219 = arith.constant 0 : index
    %c0_220 = arith.constant 0 : index
    %206 = vector.load %arg7[%c1_217, %c2_218, %c0_219, %c0_220] : memref<3x4x20x16xf32, #tpu.memory_space<vmem>>, vector<1x1x16x16xf32>
    %207 = vector.shape_cast %206 : vector<1x1x16x16xf32> to vector<16x16xf32>
    %c2_221 = arith.constant 2 : index
    %c1_222 = arith.constant 1 : index
    %208 = memref.load %arg2[%c2_221, %c1_222] : memref<4x9xf32, #tpu.memory_space<smem>>
    %209 = vector.broadcast %208 : f32 to vector<16x16xf32>
    %210 = arith.mulf %207, %209 : vector<16x16xf32>
    %211 = arith.addf %205, %210 : vector<16x16xf32>
    %c2_223 = arith.constant 2 : index
    %c2_224 = arith.constant 2 : index
    %c0_225 = arith.constant 0 : index
    %c0_226 = arith.constant 0 : index
    %212 = vector.load %arg7[%c2_223, %c2_224, %c0_225, %c0_226] : memref<3x4x20x16xf32, #tpu.memory_space<vmem>>, vector<1x1x16x16xf32>
    %213 = vector.shape_cast %212 : vector<1x1x16x16xf32> to vector<16x16xf32>
    %c2_227 = arith.constant 2 : index
    %c2_228 = arith.constant 2 : index
    %214 = memref.load %arg2[%c2_227, %c2_228] : memref<4x9xf32, #tpu.memory_space<smem>>
    %215 = vector.broadcast %214 : f32 to vector<16x16xf32>
    %216 = arith.mulf %213, %215 : vector<16x16xf32>
    %217 = arith.addf %211, %216 : vector<16x16xf32>
    %c0_229 = arith.constant 0 : index
    %c2_230 = arith.constant 2 : index
    %c2_231 = arith.constant 2 : index
    %c0_232 = arith.constant 0 : index
    %218 = vector.load %arg7[%c0_229, %c2_230, %c2_231, %c0_232] : memref<3x4x20x16xf32, #tpu.memory_space<vmem>>, vector<1x1x16x16xf32>
    %219 = vector.shape_cast %218 : vector<1x1x16x16xf32> to vector<16x16xf32>
    %c2_233 = arith.constant 2 : index
    %c3_234 = arith.constant 3 : index
    %220 = memref.load %arg2[%c2_233, %c3_234] : memref<4x9xf32, #tpu.memory_space<smem>>
    %221 = vector.broadcast %220 : f32 to vector<16x16xf32>
    %222 = arith.mulf %219, %221 : vector<16x16xf32>
    %223 = arith.addf %217, %222 : vector<16x16xf32>
    %c1_235 = arith.constant 1 : index
    %c2_236 = arith.constant 2 : index
    %c2_237 = arith.constant 2 : index
    %c0_238 = arith.constant 0 : index
    %224 = vector.load %arg7[%c1_235, %c2_236, %c2_237, %c0_238] : memref<3x4x20x16xf32, #tpu.memory_space<vmem>>, vector<1x1x16x16xf32>
    %225 = vector.shape_cast %224 : vector<1x1x16x16xf32> to vector<16x16xf32>
    %c2_239 = arith.constant 2 : index
    %c4_240 = arith.constant 4 : index
    %226 = memref.load %arg2[%c2_239, %c4_240] : memref<4x9xf32, #tpu.memory_space<smem>>
    %227 = vector.broadcast %226 : f32 to vector<16x16xf32>
    %228 = arith.mulf %225, %227 : vector<16x16xf32>
    %229 = arith.addf %223, %228 : vector<16x16xf32>
    %c2_241 = arith.constant 2 : index
    %c2_242 = arith.constant 2 : index
    %c2_243 = arith.constant 2 : index
    %c0_244 = arith.constant 0 : index
    %230 = vector.load %arg7[%c2_241, %c2_242, %c2_243, %c0_244] : memref<3x4x20x16xf32, #tpu.memory_space<vmem>>, vector<1x1x16x16xf32>
    %231 = vector.shape_cast %230 : vector<1x1x16x16xf32> to vector<16x16xf32>
    %c2_245 = arith.constant 2 : index
    %c5_246 = arith.constant 5 : index
    %232 = memref.load %arg2[%c2_245, %c5_246] : memref<4x9xf32, #tpu.memory_space<smem>>
    %233 = vector.broadcast %232 : f32 to vector<16x16xf32>
    %234 = arith.mulf %231, %233 : vector<16x16xf32>
    %235 = arith.addf %229, %234 : vector<16x16xf32>
    %c0_247 = arith.constant 0 : index
    %c2_248 = arith.constant 2 : index
    %c4_249 = arith.constant 4 : index
    %c0_250 = arith.constant 0 : index
    %236 = vector.load %arg7[%c0_247, %c2_248, %c4_249, %c0_250] : memref<3x4x20x16xf32, #tpu.memory_space<vmem>>, vector<1x1x16x16xf32>
    %237 = vector.shape_cast %236 : vector<1x1x16x16xf32> to vector<16x16xf32>
    %c2_251 = arith.constant 2 : index
    %c6_252 = arith.constant 6 : index
    %238 = memref.load %arg2[%c2_251, %c6_252] : memref<4x9xf32, #tpu.memory_space<smem>>
    %239 = vector.broadcast %238 : f32 to vector<16x16xf32>
    %240 = arith.mulf %237, %239 : vector<16x16xf32>
    %241 = arith.addf %235, %240 : vector<16x16xf32>
    %c1_253 = arith.constant 1 : index
    %c2_254 = arith.constant 2 : index
    %c4_255 = arith.constant 4 : index
    %c0_256 = arith.constant 0 : index
    %242 = vector.load %arg7[%c1_253, %c2_254, %c4_255, %c0_256] : memref<3x4x20x16xf32, #tpu.memory_space<vmem>>, vector<1x1x16x16xf32>
    %243 = vector.shape_cast %242 : vector<1x1x16x16xf32> to vector<16x16xf32>
    %c2_257 = arith.constant 2 : index
    %c7_258 = arith.constant 7 : index
    %244 = memref.load %arg2[%c2_257, %c7_258] : memref<4x9xf32, #tpu.memory_space<smem>>
    %245 = vector.broadcast %244 : f32 to vector<16x16xf32>
    %246 = arith.mulf %243, %245 : vector<16x16xf32>
    %247 = arith.addf %241, %246 : vector<16x16xf32>
    %c2_259 = arith.constant 2 : index
    %c2_260 = arith.constant 2 : index
    %c4_261 = arith.constant 4 : index
    %c0_262 = arith.constant 0 : index
    %248 = vector.load %arg7[%c2_259, %c2_260, %c4_261, %c0_262] : memref<3x4x20x16xf32, #tpu.memory_space<vmem>>, vector<1x1x16x16xf32>
    %249 = vector.shape_cast %248 : vector<1x1x16x16xf32> to vector<16x16xf32>
    %c2_263 = arith.constant 2 : index
    %c8_264 = arith.constant 8 : index
    %250 = memref.load %arg2[%c2_263, %c8_264] : memref<4x9xf32, #tpu.memory_space<smem>>
    %251 = vector.broadcast %250 : f32 to vector<16x16xf32>
    %252 = arith.mulf %249, %251 : vector<16x16xf32>
    %253 = arith.addf %247, %252 : vector<16x16xf32>
    %c0_265 = arith.constant 0 : index
    %c2_266 = arith.constant 2 : index
    %c0_267 = arith.constant 0 : index
    %c0_268 = arith.constant 0 : index
    %254 = vector.load %arg3[%c0_265, %c2_266, %c0_267, %c0_268] : memref<1x4x16x16xf32, #tpu.memory_space<vmem>>, vector<1x1x16x16xf32>
    %255 = vector.shape_cast %254 : vector<1x1x16x16xf32> to vector<16x16xf32>
    %256 = vector.shape_cast %253 : vector<16x16xf32> to vector<1x1x16x16xf32>
    tpu.vector_store %arg3[%c0_265, %c2_266, %c0_267, %c0_268], %256 {strides = array<i32>} : memref<1x4x16x16xf32, #tpu.memory_space<vmem>>, vector<1x1x16x16xf32>,
    %cst_269 = arith.constant dense<0.000000e+00> : vector<16xf32>
    %257 = vector.multi_reduction <add>, %253, %cst_269 [1] : vector<16x16xf32> to vector<16xf32>
    %258 = vector.shape_cast %257 : vector<16xf32> to vector<16x1xf32>
    %cst_270 = arith.constant dense<0.000000e+00> : vector<1xf32>
    %259 = vector.multi_reduction <add>, %258, %cst_270 [0] : vector<16x1xf32> to vector<1xf32>
    %260 = vector.shape_cast %259 : vector<1xf32> to vector<1x1xf32>
    %cst_271 = arith.constant 3.906250e-03 : f32
    %261 = vector.broadcast %cst_271 : f32 to vector<1x1xf32>
    %262 = arith.mulf %260, %261 : vector<1x1xf32>
    %263 = vector.broadcast %262 : vector<1x1xf32> to vector<16x16xf32>
    %264 = arith.subf %253, %263 : vector<16x16xf32>
    %cst_272 = arith.constant 0.000000e+00 : f32
    %265 = vector.broadcast %cst_272 : f32 to vector<16x16xf32>
    %c0_273 = arith.constant 0 : index
    %c3_274 = arith.constant 3 : index
    %c0_275 = arith.constant 0 : index
    %c0_276 = arith.constant 0 : index
    %266 = vector.load %arg7[%c0_273, %c3_274, %c0_275, %c0_276] : memref<3x4x20x16xf32, #tpu.memory_space<vmem>>, vector<1x1x16x16xf32>
    %267 = vector.shape_cast %266 : vector<1x1x16x16xf32> to vector<16x16xf32>
    %c3_277 = arith.constant 3 : index
    %c0_278 = arith.constant 0 : index
    %268 = memref.load %arg2[%c3_277, %c0_278] : memref<4x9xf32, #tpu.memory_space<smem>>
    %269 = vector.broadcast %268 : f32 to vector<16x16xf32>
    %270 = arith.mulf %267, %269 : vector<16x16xf32>
    %271 = arith.addf %265, %270 : vector<16x16xf32>
    %c1_279 = arith.constant 1 : index
    %c3_280 = arith.constant 3 : index
    %c0_281 = arith.constant 0 : index
    %c0_282 = arith.constant 0 : index
    %272 = vector.load %arg7[%c1_279, %c3_280, %c0_281, %c0_282] : memref<3x4x20x16xf32, #tpu.memory_space<vmem>>, vector<1x1x16x16xf32>
    %273 = vector.shape_cast %272 : vector<1x1x16x16xf32> to vector<16x16xf32>
    %c3_283 = arith.constant 3 : index
    %c1_284 = arith.constant 1 : index
    %274 = memref.load %arg2[%c3_283, %c1_284] : memref<4x9xf32, #tpu.memory_space<smem>>
    %275 = vector.broadcast %274 : f32 to vector<16x16xf32>
    %276 = arith.mulf %273, %275 : vector<16x16xf32>
    %277 = arith.addf %271, %276 : vector<16x16xf32>
    %c2_285 = arith.constant 2 : index
    %c3_286 = arith.constant 3 : index
    %c0_287 = arith.constant 0 : index
    %c0_288 = arith.constant 0 : index
    %278 = vector.load %arg7[%c2_285, %c3_286, %c0_287, %c0_288] : memref<3x4x20x16xf32, #tpu.memory_space<vmem>>, vector<1x1x16x16xf32>
    %279 = vector.shape_cast %278 : vector<1x1x16x16xf32> to vector<16x16xf32>
    %c3_289 = arith.constant 3 : index
    %c2_290 = arith.constant 2 : index
    %280 = memref.load %arg2[%c3_289, %c2_290] : memref<4x9xf32, #tpu.memory_space<smem>>
    %281 = vector.broadcast %280 : f32 to vector<16x16xf32>
    %282 = arith.mulf %279, %281 : vector<16x16xf32>
    %283 = arith.addf %277, %282 : vector<16x16xf32>
    %c0_291 = arith.constant 0 : index
    %c3_292 = arith.constant 3 : index
    %c2_293 = arith.constant 2 : index
    %c0_294 = arith.constant 0 : index
    %284 = vector.load %arg7[%c0_291, %c3_292, %c2_293, %c0_294] : memref<3x4x20x16xf32, #tpu.memory_space<vmem>>, vector<1x1x16x16xf32>
    %285 = vector.shape_cast %284 : vector<1x1x16x16xf32> to vector<16x16xf32>
    %c3_295 = arith.constant 3 : index
    %c3_296 = arith.constant 3 : index
    %286 = memref.load %arg2[%c3_295, %c3_296] : memref<4x9xf32, #tpu.memory_space<smem>>
    %287 = vector.broadcast %286 : f32 to vector<16x16xf32>
    %288 = arith.mulf %285, %287 : vector<16x16xf32>
    %289 = arith.addf %283, %288 : vector<16x16xf32>
    %c1_297 = arith.constant 1 : index
    %c3_298 = arith.constant 3 : index
    %c2_299 = arith.constant 2 : index
    %c0_300 = arith.constant 0 : index
    %290 = vector.load %arg7[%c1_297, %c3_298, %c2_299, %c0_300] : memref<3x4x20x16xf32, #tpu.memory_space<vmem>>, vector<1x1x16x16xf32>
    %291 = vector.shape_cast %290 : vector<1x1x16x16xf32> to vector<16x16xf32>
    %c3_301 = arith.constant 3 : index
    %c4_302 = arith.constant 4 : index
    %292 = memref.load %arg2[%c3_301, %c4_302] : memref<4x9xf32, #tpu.memory_space<smem>>
    %293 = vector.broadcast %292 : f32 to vector<16x16xf32>
    %294 = arith.mulf %291, %293 : vector<16x16xf32>
    %295 = arith.addf %289, %294 : vector<16x16xf32>
    %c2_303 = arith.constant 2 : index
    %c3_304 = arith.constant 3 : index
    %c2_305 = arith.constant 2 : index
    %c0_306 = arith.constant 0 : index
    %296 = vector.load %arg7[%c2_303, %c3_304, %c2_305, %c0_306] : memref<3x4x20x16xf32, #tpu.memory_space<vmem>>, vector<1x1x16x16xf32>
    %297 = vector.shape_cast %296 : vector<1x1x16x16xf32> to vector<16x16xf32>
    %c3_307 = arith.constant 3 : index
    %c5_308 = arith.constant 5 : index
    %298 = memref.load %arg2[%c3_307, %c5_308] : memref<4x9xf32, #tpu.memory_space<smem>>
    %299 = vector.broadcast %298 : f32 to vector<16x16xf32>
    %300 = arith.mulf %297, %299 : vector<16x16xf32>
    %301 = arith.addf %295, %300 : vector<16x16xf32>
    %c0_309 = arith.constant 0 : index
    %c3_310 = arith.constant 3 : index
    %c4_311 = arith.constant 4 : index
    %c0_312 = arith.constant 0 : index
    %302 = vector.load %arg7[%c0_309, %c3_310, %c4_311, %c0_312] : memref<3x4x20x16xf32, #tpu.memory_space<vmem>>, vector<1x1x16x16xf32>
    %303 = vector.shape_cast %302 : vector<1x1x16x16xf32> to vector<16x16xf32>
    %c3_313 = arith.constant 3 : index
    %c6_314 = arith.constant 6 : index
    %304 = memref.load %arg2[%c3_313, %c6_314] : memref<4x9xf32, #tpu.memory_space<smem>>
    %305 = vector.broadcast %304 : f32 to vector<16x16xf32>
    %306 = arith.mulf %303, %305 : vector<16x16xf32>
    %307 = arith.addf %301, %306 : vector<16x16xf32>
    %c1_315 = arith.constant 1 : index
    %c3_316 = arith.constant 3 : index
    %c4_317 = arith.constant 4 : index
    %c0_318 = arith.constant 0 : index
    %308 = vector.load %arg7[%c1_315, %c3_316, %c4_317, %c0_318] : memref<3x4x20x16xf32, #tpu.memory_space<vmem>>, vector<1x1x16x16xf32>
    %309 = vector.shape_cast %308 : vector<1x1x16x16xf32> to vector<16x16xf32>
    %c3_319 = arith.constant 3 : index
    %c7_320 = arith.constant 7 : index
    %310 = memref.load %arg2[%c3_319, %c7_320] : memref<4x9xf32, #tpu.memory_space<smem>>
    %311 = vector.broadcast %310 : f32 to vector<16x16xf32>
    %312 = arith.mulf %309, %311 : vector<16x16xf32>
    %313 = arith.addf %307, %312 : vector<16x16xf32>
    %c2_321 = arith.constant 2 : index
    %c3_322 = arith.constant 3 : index
    %c4_323 = arith.constant 4 : index
    %c0_324 = arith.constant 0 : index
    %314 = vector.load %arg7[%c2_321, %c3_322, %c4_323, %c0_324] : memref<3x4x20x16xf32, #tpu.memory_space<vmem>>, vector<1x1x16x16xf32>
    %315 = vector.shape_cast %314 : vector<1x1x16x16xf32> to vector<16x16xf32>
    %c3_325 = arith.constant 3 : index
    %c8_326 = arith.constant 8 : index
    %316 = memref.load %arg2[%c3_325, %c8_326] : memref<4x9xf32, #tpu.memory_space<smem>>
    %317 = vector.broadcast %316 : f32 to vector<16x16xf32>
    %318 = arith.mulf %315, %317 : vector<16x16xf32>
    %319 = arith.addf %313, %318 : vector<16x16xf32>
    %c0_327 = arith.constant 0 : index
    %c3_328 = arith.constant 3 : index
    %c0_329 = arith.constant 0 : index
    %c0_330 = arith.constant 0 : index
    %320 = vector.load %arg3[%c0_327, %c3_328, %c0_329, %c0_330] : memref<1x4x16x16xf32, #tpu.memory_space<vmem>>, vector<1x1x16x16xf32>
    %321 = vector.shape_cast %320 : vector<1x1x16x16xf32> to vector<16x16xf32>
    %322 = vector.shape_cast %319 : vector<16x16xf32> to vector<1x1x16x16xf32>
    tpu.vector_store %arg3[%c0_327, %c3_328, %c0_329, %c0_330], %322 {strides = array<i32>} : memref<1x4x16x16xf32, #tpu.memory_space<vmem>>, vector<1x1x16x16xf32>,
    %cst_331 = arith.constant dense<0.000000e+00> : vector<16xf32>
    %323 = vector.multi_reduction <add>, %319, %cst_331 [1] : vector<16x16xf32> to vector<16xf32>
    %324 = vector.shape_cast %323 : vector<16xf32> to vector<16x1xf32>
    %cst_332 = arith.constant dense<0.000000e+00> : vector<1xf32>
    %325 = vector.multi_reduction <add>, %324, %cst_332 [0] : vector<16x1xf32> to vector<1xf32>
    %326 = vector.shape_cast %325 : vector<1xf32> to vector<1x1xf32>
    %cst_333 = arith.constant 3.906250e-03 : f32
    %327 = vector.broadcast %cst_333 : f32 to vector<1x1xf32>
    %328 = arith.mulf %326, %327 : vector<1x1xf32>
    %329 = vector.broadcast %328 : vector<1x1xf32> to vector<16x16xf32>
    %330 = arith.subf %319, %329 : vector<16x16xf32>
    %331 = tpu.concatenate %130, %196, %262, %328 in 1 : vector<1x1xf32>, vector<1x1xf32>, vector<1x1xf32>, vector<1x1xf32> -> vector<1x4xf32>
    %c0_334 = arith.constant 0 : index
    %c0_335 = arith.constant 0 : index
    %c0_336 = arith.constant 0 : index
    %332 = vector.load %arg4[%c0_334, %c0_335, %c0_336] : memref<1x1x4xf32, #tpu.memory_space<vmem>>, vector<1x1x4xf32>
    %333 = vector.shape_cast %332 : vector<1x1x4xf32> to vector<1x4xf32>
    %334 = vector.shape_cast %331 : vector<1x4xf32> to vector<1x1x4xf32>
    tpu.vector_store %arg4[%c0_334, %c0_335, %c0_336], %334 {strides = array<i32>} : memref<1x1x4xf32, #tpu.memory_space<vmem>>, vector<1x1x4xf32>,
    %335 = arith.mulf %132, %132 : vector<16x16xf32>
    %cst_337 = arith.constant dense<0.000000e+00> : vector<16xf32>
    %336 = vector.multi_reduction <add>, %335, %cst_337 [1] : vector<16x16xf32> to vector<16xf32>
    %337 = vector.shape_cast %336 : vector<16xf32> to vector<16x1xf32>
    %cst_338 = arith.constant dense<0.000000e+00> : vector<1xf32>
    %338 = vector.multi_reduction <add>, %337, %cst_338 [0] : vector<16x1xf32> to vector<1xf32>
    %339 = vector.shape_cast %338 : vector<1xf32> to vector<1x1xf32>
    %340 = arith.mulf %132, %198 : vector<16x16xf32>
    %cst_339 = arith.constant dense<0.000000e+00> : vector<16xf32>
    %341 = vector.multi_reduction <add>, %340, %cst_339 [1] : vector<16x16xf32> to vector<16xf32>
    %342 = vector.shape_cast %341 : vector<16xf32> to vector<16x1xf32>
    %cst_340 = arith.constant dense<0.000000e+00> : vector<1xf32>
    %343 = vector.multi_reduction <add>, %342, %cst_340 [0] : vector<16x1xf32> to vector<1xf32>
    %344 = vector.shape_cast %343 : vector<1xf32> to vector<1x1xf32>
    %345 = arith.mulf %132, %264 : vector<16x16xf32>
    %cst_341 = arith.constant dense<0.000000e+00> : vector<16xf32>
    %346 = vector.multi_reduction <add>, %345, %cst_341 [1] : vector<16x16xf32> to vector<16xf32>
    %347 = vector.shape_cast %346 : vector<16xf32> to vector<16x1xf32>
    %cst_342 = arith.constant dense<0.000000e+00> : vector<1xf32>
    %348 = vector.multi_reduction <add>, %347, %cst_342 [0] : vector<16x1xf32> to vector<1xf32>
    %349 = vector.shape_cast %348 : vector<1xf32> to vector<1x1xf32>
    %350 = arith.mulf %132, %330 : vector<16x16xf32>
    %cst_343 = arith.constant dense<0.000000e+00> : vector<16xf32>
    %351 = vector.multi_reduction <add>, %350, %cst_343 [1] : vector<16x16xf32> to vector<16xf32>
    %352 = vector.shape_cast %351 : vector<16xf32> to vector<16x1xf32>
    %cst_344 = arith.constant dense<0.000000e+00> : vector<1xf32>
    %353 = vector.multi_reduction <add>, %352, %cst_344 [0] : vector<16x1xf32> to vector<1xf32>
    %354 = vector.shape_cast %353 : vector<1xf32> to vector<1x1xf32>
    %355 = tpu.concatenate %339, %344, %349, %354 in 1 : vector<1x1xf32>, vector<1x1xf32>, vector<1x1xf32>, vector<1x1xf32> -> vector<1x4xf32>
    %356 = arith.mulf %198, %132 : vector<16x16xf32>
    %cst_345 = arith.constant dense<0.000000e+00> : vector<16xf32>
    %357 = vector.multi_reduction <add>, %356, %cst_345 [1] : vector<16x16xf32> to vector<16xf32>
    %358 = vector.shape_cast %357 : vector<16xf32> to vector<16x1xf32>
    %cst_346 = arith.constant dense<0.000000e+00> : vector<1xf32>
    %359 = vector.multi_reduction <add>, %358, %cst_346 [0] : vector<16x1xf32> to vector<1xf32>
    %360 = vector.shape_cast %359 : vector<1xf32> to vector<1x1xf32>
    %361 = arith.mulf %198, %198 : vector<16x16xf32>
    %cst_347 = arith.constant dense<0.000000e+00> : vector<16xf32>
    %362 = vector.multi_reduction <add>, %361, %cst_347 [1] : vector<16x16xf32> to vector<16xf32>
    %363 = vector.shape_cast %362 : vector<16xf32> to vector<16x1xf32>
    %cst_348 = arith.constant dense<0.000000e+00> : vector<1xf32>
    %364 = vector.multi_reduction <add>, %363, %cst_348 [0] : vector<16x1xf32> to vector<1xf32>
    %365 = vector.shape_cast %364 : vector<1xf32> to vector<1x1xf32>
    %366 = arith.mulf %198, %264 : vector<16x16xf32>
    %cst_349 = arith.constant dense<0.000000e+00> : vector<16xf32>
    %367 = vector.multi_reduction <add>, %366, %cst_349 [1] : vector<16x16xf32> to vector<16xf32>
    %368 = vector.shape_cast %367 : vector<16xf32> to vector<16x1xf32>
    %cst_350 = arith.constant dense<0.000000e+00> : vector<1xf32>
    %369 = vector.multi_reduction <add>, %368, %cst_350 [0] : vector<16x1xf32> to vector<1xf32>
    %370 = vector.shape_cast %369 : vector<1xf32> to vector<1x1xf32>
    %371 = arith.mulf %198, %330 : vector<16x16xf32>
    %cst_351 = arith.constant dense<0.000000e+00> : vector<16xf32>
    %372 = vector.multi_reduction <add>, %371, %cst_351 [1] : vector<16x16xf32> to vector<16xf32>
    %373 = vector.shape_cast %372 : vector<16xf32> to vector<16x1xf32>
    %cst_352 = arith.constant dense<0.000000e+00> : vector<1xf32>
    %374 = vector.multi_reduction <add>, %373, %cst_352 [0] : vector<16x1xf32> to vector<1xf32>
    %375 = vector.shape_cast %374 : vector<1xf32> to vector<1x1xf32>
    %376 = tpu.concatenate %360, %365, %370, %375 in 1 : vector<1x1xf32>, vector<1x1xf32>, vector<1x1xf32>, vector<1x1xf32> -> vector<1x4xf32>
    %377 = arith.mulf %264, %132 : vector<16x16xf32>
    %cst_353 = arith.constant dense<0.000000e+00> : vector<16xf32>
    %378 = vector.multi_reduction <add>, %377, %cst_353 [1] : vector<16x16xf32> to vector<16xf32>
    %379 = vector.shape_cast %378 : vector<16xf32> to vector<16x1xf32>
    %cst_354 = arith.constant dense<0.000000e+00> : vector<1xf32>
    %380 = vector.multi_reduction <add>, %379, %cst_354 [0] : vector<16x1xf32> to vector<1xf32>
    %381 = vector.shape_cast %380 : vector<1xf32> to vector<1x1xf32>
    %382 = arith.mulf %264, %198 : vector<16x16xf32>
    %cst_355 = arith.constant dense<0.000000e+00> : vector<16xf32>
    %383 = vector.multi_reduction <add>, %382, %cst_355 [1] : vector<16x16xf32> to vector<16xf32>
    %384 = vector.shape_cast %383 : vector<16xf32> to vector<16x1xf32>
    %cst_356 = arith.constant dense<0.000000e+00> : vector<1xf32>
    %385 = vector.multi_reduction <add>, %384, %cst_356 [0] : vector<16x1xf32> to vector<1xf32>
    %386 = vector.shape_cast %385 : vector<1xf32> to vector<1x1xf32>
    %387 = arith.mulf %264, %264 : vector<16x16xf32>
    %cst_357 = arith.constant dense<0.000000e+00> : vector<16xf32>
    %388 = vector.multi_reduction <add>, %387, %cst_357 [1] : vector<16x16xf32> to vector<16xf32>
    %389 = vector.shape_cast %388 : vector<16xf32> to vector<16x1xf32>
    %cst_358 = arith.constant dense<0.000000e+00> : vector<1xf32>
    %390 = vector.multi_reduction <add>, %389, %cst_358 [0] : vector<16x1xf32> to vector<1xf32>
    %391 = vector.shape_cast %390 : vector<1xf32> to vector<1x1xf32>
    %392 = arith.mulf %264, %330 : vector<16x16xf32>
    %cst_359 = arith.constant dense<0.000000e+00> : vector<16xf32>
    %393 = vector.multi_reduction <add>, %392, %cst_359 [1] : vector<16x16xf32> to vector<16xf32>
    %394 = vector.shape_cast %393 : vector<16xf32> to vector<16x1xf32>
    %cst_360 = arith.constant dense<0.000000e+00> : vector<1xf32>
    %395 = vector.multi_reduction <add>, %394, %cst_360 [0] : vector<16x1xf32> to vector<1xf32>
    %396 = vector.shape_cast %395 : vector<1xf32> to vector<1x1xf32>
    %397 = tpu.concatenate %381, %386, %391, %396 in 1 : vector<1x1xf32>, vector<1x1xf32>, vector<1x1xf32>, vector<1x1xf32> -> vector<1x4xf32>
    %398 = arith.mulf %330, %132 : vector<16x16xf32>
    %cst_361 = arith.constant dense<0.000000e+00> : vector<16xf32>
    %399 = vector.multi_reduction <add>, %398, %cst_361 [1] : vector<16x16xf32> to vector<16xf32>
    %400 = vector.shape_cast %399 : vector<16xf32> to vector<16x1xf32>
    %cst_362 = arith.constant dense<0.000000e+00> : vector<1xf32>
    %401 = vector.multi_reduction <add>, %400, %cst_362 [0] : vector<16x1xf32> to vector<1xf32>
    %402 = vector.shape_cast %401 : vector<1xf32> to vector<1x1xf32>
    %403 = arith.mulf %330, %198 : vector<16x16xf32>
    %cst_363 = arith.constant dense<0.000000e+00> : vector<16xf32>
    %404 = vector.multi_reduction <add>, %403, %cst_363 [1] : vector<16x16xf32> to vector<16xf32>
    %405 = vector.shape_cast %404 : vector<16xf32> to vector<16x1xf32>
    %cst_364 = arith.constant dense<0.000000e+00> : vector<1xf32>
    %406 = vector.multi_reduction <add>, %405, %cst_364 [0] : vector<16x1xf32> to vector<1xf32>
    %407 = vector.shape_cast %406 : vector<1xf32> to vector<1x1xf32>
    %408 = arith.mulf %330, %264 : vector<16x16xf32>
    %cst_365 = arith.constant dense<0.000000e+00> : vector<16xf32>
    %409 = vector.multi_reduction <add>, %408, %cst_365 [1] : vector<16x16xf32> to vector<16xf32>
    %410 = vector.shape_cast %409 : vector<16xf32> to vector<16x1xf32>
    %cst_366 = arith.constant dense<0.000000e+00> : vector<1xf32>
    %411 = vector.multi_reduction <add>, %410, %cst_366 [0] : vector<16x1xf32> to vector<1xf32>
    %412 = vector.shape_cast %411 : vector<1xf32> to vector<1x1xf32>
    %413 = arith.mulf %330, %330 : vector<16x16xf32>
    %cst_367 = arith.constant dense<0.000000e+00> : vector<16xf32>
    %414 = vector.multi_reduction <add>, %413, %cst_367 [1] : vector<16x16xf32> to vector<16xf32>
    %415 = vector.shape_cast %414 : vector<16xf32> to vector<16x1xf32>
    %cst_368 = arith.constant dense<0.000000e+00> : vector<1xf32>
    %416 = vector.multi_reduction <add>, %415, %cst_368 [0] : vector<16x1xf32> to vector<1xf32>
    %417 = vector.shape_cast %416 : vector<1xf32> to vector<1x1xf32>
    %418 = tpu.concatenate %402, %407, %412, %417 in 1 : vector<1x1xf32>, vector<1x1xf32>, vector<1x1xf32>, vector<1x1xf32> -> vector<1x4xf32>
    %419 = tpu.concatenate %355, %376, %397, %418 in 0 : vector<1x4xf32>, vector<1x4xf32>, vector<1x4xf32>, vector<1x4xf32> -> vector<4x4xf32>
    %c0_369 = arith.constant 0 : index
    %c0_370 = arith.constant 0 : index
    %c0_371 = arith.constant 0 : index
    %420 = vector.load %arg5[%c0_369, %c0_370, %c0_371] : memref<1x4x4xf32, #tpu.memory_space<vmem>>, vector<1x4x4xf32>
    %421 = vector.shape_cast %420 : vector<1x4x4xf32> to vector<4x4xf32>
    %422 = vector.shape_cast %419 : vector<4x4xf32> to vector<1x4x4xf32>
    tpu.vector_store %arg5[%c0_369, %c0_370, %c0_371], %422 {strides = array<i32>} : memref<1x4x4xf32, #tpu.memory_space<vmem>>, vector<1x4x4xf32>,
    return
  }
  func.func @transform_0(%arg0: i32) -> (i32, i32, i32, i32) {
    %c0_i32 = arith.constant 0 : i32
    %c0_i32_0 = arith.constant 0 : i32
    %c0_i32_1 = arith.constant 0 : i32
    %c0_i32_2 = arith.constant 0 : i32
    return %arg0, %c0_i32, %c0_i32_0, %c0_i32_1 : i32, i32, i32, i32
  }
  func.func @transform_1(%arg0: i32) -> (i32, i32) {
    %c0_i32 = arith.constant 0 : i32
    %c0_i32_0 = arith.constant 0 : i32
    %c0_i32_1 = arith.constant 0 : i32
    return %c0_i32, %c0_i32_0 : i32, i32
  }
  func.func @transform_2(%arg0: i32) -> (i32, i32, i32, i32) {
    %c0_i32 = arith.constant 0 : i32
    %c0_i32_0 = arith.constant 0 : i32
    %c0_i32_1 = arith.constant 0 : i32
    %c0_i32_2 = arith.constant 0 : i32
    return %arg0, %c0_i32, %c0_i32_0, %c0_i32_1 : i32, i32, i32, i32
  }
  func.func @transform_3(%arg0: i32) -> (i32, i32, i32) {
    %c0_i32 = arith.constant 0 : i32
    %c0_i32_0 = arith.constant 0 : i32
    %c0_i32_1 = arith.constant 0 : i32
    return %arg0, %c0_i32, %c0_i32_0 : i32, i32, i32
  }
  func.func @transform_4(%arg0: i32) -> (i32, i32, i32) {
    %c0_i32 = arith.constant 0 : i32
    %c0_i32_0 = arith.constant 0 : i32
    %c0_i32_1 = arith.constant 0 : i32
    return %arg0, %c0_i32, %c0_i32_0 : i32, i32, i32
  }
}

</mosaic_0001>

<bundles_post_ra>
// kernel: tpu_custom_call.1
= control target key start
LH: loop header
LB: loop body
LE: loop exit
PB: predicated region body
PF: predicated region fallthrough
CT: control target
= control target key end

     0   :  { %s2195_s0 = inlined_call_operand.hbm [shape: f32[2,4,16,16], index: 0, kind: input, shape index: {}]   ;;  %s2196_s1 = inlined_call_operand.hbm [shape: f32[4,9], index: 1, kind: input, shape index: {}]   ;;  %s2197_s2 = inlined_call_operand.hbm [shape: f32[2,4,16,16], index: 2, kind: output, shape index: {0}]   ;;  %s2198_s3 = inlined_call_operand.hbm [shape: f32[2,1,4], index: 3, kind: output, shape index: {1}]   ;;  %s2199_s4 = inlined_call_operand.hbm [shape: f32[2,4,4], index: 4, kind: output, shape index: {2}]  }
   0x1   :  { %2217 = sst [smem:[#allocation26_spill]] %s2195_s0 }
   0x2   :  { %2218 = sst [smem:[#allocation27_spill]] %s2196_s1 }
   0x3   :  { %2219 = sst [smem:[#allocation28_spill]] %s2197_s2 }
   0x4   :  { %2220 = sst [smem:[#allocation29_spill]] %s2198_s3 }
   0x5   :  { %2221 = sst [smem:[#allocation30_spill]] %s2199_s4 }
   0x6   :  { %10 = vsyncpa [#allocation5], 0 }
   0x7   :  { %12 = vsyncpa [#allocation5 + $0x1], 0 }
   0x8   :  { %13 = vsyncpa [#allocation7], 0 }
   0x9   :  { %14 = vsyncpa [#allocation6], 0 }
   0xa   :  { %16 = vsyncpa [#allocation6 + $0x1], 0 }
   0xb   :  { %17 = vsyncpa [#allocation11], 0 }
   0xc   :  { %19 = vsyncpa [#allocation11 + $0x1], 0  ;;  %s1597_s15 = smov 0   ;;  %s1599_s16 = smov 0  }
   0xd   :  { %s1601_s17 = smov 0   ;;  %s1603_s18 = smov 0  }
   0xe LB: > { %2222 = sst [smem:[#allocation17_spill]] %s1549_s15  ;;  %s1618_s19 = sadd.s32 4294967295, %s1561_s18   ;;  %s1561_s18 = sphi %s1603_s18, %s2251_s18   ;;  %s1557_s17 = sphi %s1601_s17, %s2254_s17   ;;  %s1553_s16 = sphi %s1599_s16, %s2253_s16   ;;  %s1549_s15 = sphi %s1597_s15, %s2252_s15  }
   0xf   : > { %2223 = sst [smem:[#allocation18_spill]] %s1553_s16  ;;  %s2200_s20 = sadd.s32 4294967294, %s1561_s18  }
  0x10   : > { %2224 = sst [smem:[#allocation19_spill]] %s1557_s17  ;;  %s1622_s21 = sadd.s32 1, %s1561_s18  }
  0x11   : > { %2225 = sst [smem:[#allocation20_spill]] %s1561_s18  ;;  %s32_s22 = sadd.s32 1, %s1557_s17 }
  0x12   : > { %2226 = sst [smem:[#allocation21_spill]] %s1618_s19  ;;  %s29_s23 = ssub.s32 %s1561_s18, %s1622_s21 }
  0x13   : > { %2227 = sst [smem:[#allocation22_spill]] %s1622_s21  ;;  %p39_p0 = scmp.ne.s32.totalorder %s1557_s17, %s1553_s16 }
  0x14   : > { %p30_p1 = scmp.eq.s32.totalorder %s29_s23, 0  ;;  %p40_p2 = scmp.eq.s32.totalorder %s1561_s18, 0 }
  0x15   : > { %p45_p3 = scmp.ne.s32.totalorder %s1553_s16, %s1549_s15  ;;  %p46_p4 = scmp.eq.s32.totalorder %s1618_s19, 0 }
  0x16   : > { %s1634_s24 = scalar_select %p30_p1, %s1557_s17, %s32_s22  }
  0x17   : > { %p1636_p5 = por %p40_p2, %p39_p0  ;;  %p1642_p6 = por %p46_p4, %p45_p3 }
  0x18   : > { %2228 = sst [smem:[#allocation23_spill]] %s1634_s24  ;;  %p90_p7 = scmp.eq.s32.totalorder %s1618_s19, 1 }
  0x19   : > { %p96_p8 = scmp.eq.s32.totalorder %s2200_s20, 1  ;;  %p1250_p9 = scmp.ge.s32.totalorder %s1561_s18, 1 }
  0x1a   : > { %p155_p10 = scmp.lt.s32.totalorder %s1561_s18, 3  ;;  %p1651_p11 = por %p90_p7, %p39_p0 }
  0x1b   : > { %p1655_p12 = por %p96_p8, %p45_p3  ;;  %s2236_s1 = sld [smem:[#allocation27_spill]] }
  0x1c   : > { %s2231_s27 = scalar_select %p1651_p11, 1, 0 }
  0x1d   : > { %s2233_s28 = scalar_select %p1655_p12, 1, 0 }
  0x1e   : > { %2232 = sst [smem:[#allocation24_spill]] %s2231_s27  ;;  %p1659_p13 = pnand %p1250_p9, %p155_p10 }
  0x1f   : > { %2234 = sst [smem:[#allocation25_spill]] %s2233_s28  ;;  %p1342_p2 = scmp.lt.s32.totalorder %s1561_s18, 2 }
  0x20   : > { %p1323_p1 = pneg %p1659_p13  ;;  %s178_s7 = sand.u32 1, %s1557_s17  }
  0x21   : > { %s167_s6 = sshll.u32 %s2236_s1, 4  ;;  %p1675_p3 = pnand %p1342_p2, %p1636_p5  ;;  %s168_s6 = int_to_ptr.hbm [resolvable:$true] %s167_s6 }
  0x22   : > { %p1324_p7 = pnand %p1323_p1, %p46_p4  ;;  %s1253_s9 = sshll.u32 %s178_s7, 6 }
  0x23   : > { %s1563_s10 = smov [#allocation8]   ;;  %s1309_s11 = sshll.u32 %s1561_s18, 6 }
  0x24   : > { %1326 = dma.hbm_to_smem (!%p1324_p7), %s168_s6, 64, %s1563_s10, [#allocation7]  }
  0x25   : > { %s182_s12 = scalar_lea.vmem [#allocation4], %s1253_s9  ;;  %s2238_s0 = sld [smem:[#allocation26_spill]] }
  0x26   : > { %s190_s13 = sshll.u32 %s182_s12, 4  ;;  %s179_s5 = scalar_lea.sflag [#allocation5], %s178_s7  ;;  %s191_s13 = int_to_ptr.vmem [resolvable:$true] %s190_s13 }
  0x27   : > { %p1405_p8 = pneg %p1675_p3 }
  0x2b   : > { %s187_s23 = scalar_lea.hbm %s2238_s0, %s1309_s11  ;;  %s1408_s9 = scalar_lea.hbm %s2238_s0, 128 }
  0x2c   : > { %s188_s30 = sshll.u32 %s187_s23, 4  ;;  %s189_s30 = int_to_ptr.hbm [resolvable:$true] %s188_s30 }
  0x2d   : > { %s1401_s25 = sshra.s32 %s189_s30, 4  ;;  %s1402_s25 = int_to_ptr.hbm [resolvable:$true] %s1401_s25 }
  0x2e   : > { %s1403_s20 = scalar_lea.hbm %s1402_s25, 64  ;;  %p1409_p1 = scmp.lt.s32.totalorder %s1402_s25, %s2238_s0 }
  0x2f   : > { %p1404_p5 = scmp.ne.s32.totalorder %s1402_s25, %s1403_s20  ;;  %p1410_p2 = scmp.lt.s32.totalorder %s1408_s9, %s1403_s20 }
  0x31   : > { %p1406_p9 = pnand %p1405_p8, %p1404_p5  ;;  %p1411_p7 = por %p1410_p2, %p1409_p1 }
  0x33   : > { %p1407_p10 = pneg %p1406_p9 }
  0x35   : > { %p1412_p0 = pnand %p1411_p7, %p1407_p10 }
  0x37   : > { %1415 = shalt.err (!%p1412_p0)
}
  0x38   : > { %s1564_s7 = smov 128   ;;  %s1565_s11 = smov 8  }
  0x39   : > { %1330 = dma.hbm_to_vmem [thread:$0]  (!%p1675_p3), %s189_s30, 1024, %s191_s13, %s179_s5, %s1564_s7, %s1564_s7, %s1565_s11  }
  0x3a   : > { %202 = sbr.rel (%p1659_p13) target bundleno = 709 (0x2c5), region = 28  ;;  %s1696_s14 = sand.u32 (!%p1659_p13), 1, %s1553_s16  }
  0x3b   : > { %s2201_s1 = sshll.u32 (!%p1659_p13), %s1696_s14, 6  ;;  %s205_s20 = scalar_lea.sflag (!%p1659_p13), [#allocation5], %s1696_s14 }
  0x3c   : > { %s208_s22 = scalar_lea.vmem (!%p1659_p13), [#allocation4], %s2201_s1 }
  0x3f   : > { %1532 = dma.done.wait (%p1642_p6), %s205_s20, 1024  }
  0x40   : > { %1534 = vsyncadd (%p1642_p6), %s205_s20, 4294966272 }
  0x41   : > { %1536 = dma.done.wait (%p46_p4), [#allocation7], 64  }
  0x42   : > { %1538 = vsyncadd (%p46_p4), [#allocation7], 4294967232 }
  0x43   : > { %219 = sfence }
  0x44   : > { %v265_v0 = vld [vmem:[%s208_s22 + $0x10] sm:$0xff]  ;;  %v263_v1 = vld [vmem:[%s208_s22] sm:$0xff]  ;;  %s1566_s29 = smov 2   ;;  %v266_v6 = vld [vmem:[%s208_s22 + $0x18] sm:$0xff]  ;;  %vm249_vm0 = vcmask 162816   ;;  %v1567_v16 = vmov 0.0  }
  0x45   : > { %v273_v2 = vmax.f32 %v265_v0, 0.0  ;;  %v271_v3 = vmax.f32 %v263_v1, 0.0  ;;  %v267_v4 = vld [vmem:[%s208_s22 + $0x20] sm:$0xff]  ;;  %v264_v7 = vld [vmem:[%s208_s22 + $0x8] sm:$0xff]  ;;  %v274_v9 = vmax.f32 %v266_v6, 0.0  ;;  %v269_v12 = vld [vmem:[%s208_s22 + $0x30] sm:$0xff] }
  0x46   : > { %v275_v5 = vmax.f32 %v267_v4, 0.0  ;;  %v268_v8 = vld [vmem:[%s208_s22 + $0x28] sm:$0xff]  ;;  %v272_v10 = vmax.f32 %v264_v7, 0.0  ;;  %v270_v13 = vld [vmem:[%s208_s22 + $0x38] sm:$0xff]  ;;  %v277_v14 = vmax.f32 %v269_v12, 0.0  ;;  %257 = vst.msk [vmem:[#allocation2 + $0x30] sm:$0xff] %vm249_vm0, %v1567_v16 }
  0x47   : > { %291 = vrot.lane.b32.xlu1 %v273_v2, %s1566_s29  ;;  %287 = vrot.lane.b32.xlu0 %v271_v3, %s1566_s29  ;;  %v276_v11 = vmax.f32 %v268_v8, 0.0  ;;  %v278_v15 = vmax.f32 %v270_v13, 0.0  ;;  %258 = vst.msk [vmem:[#allocation2 + $0x38] sm:$0xff] %vm249_vm0, %v1567_v16  ;;  %vm252_vm1 = vcmask 158720   ;;  %vm311_vm2 = vcmask 146448   ;;  %s1568_s26 = smov 126  }
  0x48   : > { %295 = vrot.lane.b32.xlu2 %v275_v5, %s1566_s29  ;;  %250 = vst.msk [vmem:[#allocation2] sm:$0xff] %vm249_vm0, %v1567_v16  ;;  %vm323_vm3 = vcmask 130048   ;;  %vm326_vm4 = vcmask 125952   ;;  %s1569_s8 = smov 124   ;;  %s1747_s13 = sld [smem:[#allocation8]]  ;;  %vm867_vm5 = vcmask 7168  }
  0x49   : > { %251 = vst.msk [vmem:[#allocation2 + $0x8] sm:$0xff] %vm249_vm0, %v1567_v16  ;;  %s1749_s23 = sld [smem:[#allocation8 + $0x3]]  ;;  %vm869_vm6 = vcmask 15360   ;;  %vm871_vm7 = vcmask 23552   ;;  %vm873_vm8 = vcmask 24576  }
  0x4a   : > { %254 = vst.msk [vmem:[#allocation2 + $0x18] sm:$0xff] %vm249_vm0, %v1567_v16  ;;  %s1752_s30 = sld [smem:[#allocation8 + $0x6]] }
  0x4b   : > { %255 = vst.msk [vmem:[#allocation2 + $0x20] sm:$0xff] %vm249_vm0, %v1567_v16  ;;  %s1754_s5 = sld [smem:[#allocation8 + $0x1]] }
  0x4c   : > { %260 = vst.msk [vmem:[#allocation2 + $0x48] sm:$0xff] %vm249_vm0, %v1567_v16  ;;  %s1757_s25 = sld [smem:[#allocation8 + $0x80]] }
  0x4d   : > { %261 = vst.msk [vmem:[#allocation2 + $0x50] sm:$0xff] %vm249_vm0, %v1567_v16  ;;  %s1760_s6 = sld [smem:[#allocation8 + $0x83]] }
  0x4e   : > { %259 = vst.msk [vmem:[#allocation2 + $0x40] sm:$0xf] %vm252_vm1, %v1567_v16  ;;  %s1762_s10 = sld [smem:[#allocation8 + $0x86]]  ;;  %v507_v59 = vstv %s1747_s13  ;;  %s2239_s13 = sshll.u32 %s1696_s14, 6 }
  0x4f   : > { %293 = vrot.lane.b32.xlu1 %v274_v9, %s1566_s29  ;;  %289 = vrot.lane.b32.xlu0 %v272_v10, %s1566_s29  ;;  %253 = vst.msk [vmem:[#allocation2 + $0x10] sm:$0xf] %vm252_vm1, %v1567_v16  ;;  %s1764_s9 = sld [smem:[#allocation8 + $0x100]]  ;;  %v531_v2 = vstv %s1749_s23  ;;  %s1909_s19 = scalar_lea.vmem [#allocation9], %s2239_s13 }
  0x50   : > { %297 = vrot.lane.b32.xlu2 %v276_v11, %s1566_s29  ;;  %256 = vst.msk [vmem:[#allocation2 + $0x28] sm:$0xf] %vm252_vm1, %v1567_v16  ;;  %s1766_s12 = sld [smem:[#allocation8 + $0x103]] }
  0x51   : > { %262 = vst.msk [vmem:[#allocation2 + $0x58] sm:$0xf] %vm252_vm1, %v1567_v16  ;;  %s1768_s7 = sld [smem:[#allocation8 + $0x2]]  ;;  %v515_v56 = vstv %s1754_s5 }
  0x52   : > { %s1771_s11 = sld [smem:[#allocation8 + $0x106]] }
  0x53   : > { %s1774_s20 = sld [smem:[#allocation8 + $0x4]] }
  0x54   : > { %s1777_s22 = sld [smem:[#allocation8 + $0x180]] }
  0x55   : > { %s1791_s1 = sld [smem:[#allocation8 + $0x81]]  ;;  %v688_v16 = vstv %s1764_s9 }
  0x56   : > { %s1795_s0 = sld [smem:[#allocation8 + $0x7]] }
  0x57   : > { %299 = vrot.lane.b32.xlu0 %v277_v14, %s1566_s29  ;;  %301 = vrot.lane.b32.xlu1 %v278_v15, %s1566_s29  ;;  %s1781_s29 = sld [smem:[#allocation8 + $0x5]]  ;;  %v523_v0 = vstv %s1768_s7 }
  0x58   : > { %s1800_s24 = sld [smem:[#allocation8 + $0x181]] }
  0x59   : > { %v539_v7 = vstv %s1774_s20  ;;  %s1803_s17 = sld [smem:[#allocation8 + $0x8]] }
  0x5a   : > { %s1808_s16 = sld [smem:[#allocation8 + $0x101]] }
  0x5b   : > { %s1812_s21 = sld [smem:[#allocation8 + $0x84]] }
  0x5c   : > { %s1816_s18 = sld [smem:[#allocation8 + $0x87]] }
  0x5d   : > { %v547_v12 = vstv %s1781_s29  ;;  %s1820_s28 = sld [smem:[#allocation8 + $0x82]] }
  0x5e   : > { %s1827_s15 = sld [smem:[#allocation8 + $0x102]] }
  0x5f   : > { %s1832_s4 = sld [smem:[#allocation8 + $0x182]] }
  0x60   : > { %s1876_s2 = sld [smem:[#allocation8 + $0x187]] }
  0x61   : > { %s1887_s3 = sld [smem:[#allocation8 + $0x85]] }
  0x62   : > { %s1905_s27 = sld [smem:[#allocation8 + $0x105]] }
  0x63   : > { %s1934_s13 = sld [smem:[#allocation8 + $0x108]] }
  0xa2   : > { %v296_v17 = vpop.permute.xlu2 %295 }
  0xa3   : > { %316 = vst.msk [vmem:[#allocation2 + $0x32] sm:$0xff] %vm311_vm2, %v296_v17 }
  0xaa   : > { %v337_v18 = vld [vmem:[#allocation2 + $0x30] sm:$0xff]  ;;  %v298_v19 = vpop.permute.xlu2 %297 }
  0xab   : > { %341 = vst.msk [vmem:[#allocation3 + $0x30] sm:$0xff] %vm323_vm3, %v337_v18 }
  0xac   : > { %317 = vst.msk [vmem:[#allocation2 + $0x3a] sm:$0xff] %vm311_vm2, %v298_v19 }
  0xb2   : > { %v685_v15 = vld [vmem:[#allocation3 + $0x30] sm:$0xff] }
  0xb3   : > { %v338_v20 = vld [vmem:[#allocation2 + $0x38] sm:$0xff]  ;;  %v339_v21 = vld [vmem:[#allocation2 + $0x40] sm:$0xf] }
  0xb4   : > { %342 = vst.msk [vmem:[#allocation3 + $0x38] sm:$0xff] %vm323_vm3, %v338_v20  ;;  %v392_v39 = vld [vmem:[#allocation2 + $0x40] sm:$0xf] }
  0xb5   : > { %343 = vst.msk [vmem:[#allocation3 + $0x40] sm:$0xf] %vm326_vm4, %v339_v21  ;;  %v468_v44 = vld [vmem:[#allocation2 + $0x40] sm:$0xf] }
  0xb9   : > { %v292_v22 = vpop.permute.xlu1 %291  ;;  %v288_v23 = vpop.permute.xlu0 %287 }
  0xba   : > { %314 = vst.msk [vmem:[#allocation2 + $0x1a] sm:$0xff] %vm311_vm2, %v292_v22  ;;  %v736_v22 = vstv %s1771_s11 }
  0xbb   : > { %312 = vst.msk [vmem:[#allocation2 + $0x2] sm:$0xff] %vm311_vm2, %v288_v23  ;;  %v709_v19 = vld [vmem:[#allocation3 + $0x32] sm:$0xff] }
  0xbc   : > { %v733_v21 = vld [vmem:[#allocation3 + $0x34] sm:$0xff] }
  0xc1   : > { %v329_v24 = vld [vmem:[#allocation2 + $0x18] sm:$0xff]  ;;  %v294_v25 = vpop.permute.xlu1 %293  ;;  %v290_v26 = vpop.permute.xlu0 %289 }
  0xc2   : > { %333 = vst.msk [vmem:[#allocation3 + $0x18] sm:$0xff] %vm323_vm3, %v329_v24  ;;  %v320_v27 = vld [vmem:[#allocation2] sm:$0xff]  ;;  %377 = vrot.lane.b32.xlu1 %v329_v24, %s1568_s26 }
  0xc3   : > { %324 = vst.msk [vmem:[#allocation3] sm:$0xff] %vm323_vm3, %v320_v27  ;;  %358 = vrot.lane.b32.xlu2 %v320_v27, %s1568_s26 }
  0xc4   : > { %315 = vst.msk [vmem:[#allocation2 + $0x22] sm:$0xff] %vm311_vm2, %v294_v25  ;;  %v597_v25 = vstv %s1757_s25  ;;  %s1845_s25 = sld [smem:[#allocation8 + $0x104]] }
  0xc5   : > { %313 = vst.msk [vmem:[#allocation2 + $0xa] sm:$0xff] %vm311_vm2, %v290_v26 }
  0xc9   : > { %v300_v28 = vpop.permute.xlu0 %299  ;;  %v302_v29 = vpop.permute.xlu1 %301 }
  0xca   : > { %318 = vst.msk [vmem:[#allocation2 + $0x4a] sm:$0xff] %vm311_vm2, %v300_v28  ;;  %398 = vrot.lane.b32.xlu1 %v338_v20, %s1568_s26  ;;  %v504_v58 = vld [vmem:[#allocation3] sm:$0xff]  ;;  %v563_v28 = vstv %s1795_s0  ;;  %s241_s0 = scalar_lea.vmem [#allocation10], %s1696_s14 }
  0xcb   : > { %v330_v30 = vld [vmem:[#allocation2 + $0x20] sm:$0xff]  ;;  %v331_v31 = vld [vmem:[#allocation2 + $0x28] sm:$0xf]  ;;  %319 = vst.msk [vmem:[#allocation2 + $0x52] sm:$0xff] %vm311_vm2, %v302_v29  ;;  %v508_v61 = vmul.f32 %v507_v59, %v504_v58  ;;  %v621_v29 = vstv %s1760_s6  ;;  %s1855_s6 = sld [smem:[#allocation8 + $0x184]] }
  0xcc   : > { %334 = vst.msk [vmem:[#allocation3 + $0x20] sm:$0xff] %vm323_vm3, %v330_v30  ;;  %v321_v32 = vld [vmem:[#allocation2 + $0x8] sm:$0xff]  ;;  %v322_v33 = vld [vmem:[#allocation2 + $0x10] sm:$0xf]  ;;  %379 = vrot.lane.b32.xlu2 %v330_v30, %s1568_s26 }
  0xcd   : > { %335 = vst.msk [vmem:[#allocation3 + $0x28] sm:$0xf] %vm326_vm4, %v331_v31  ;;  %360 = vrot.lane.b32.xlu0 %v321_v32, %s1568_s26  ;;  %v373_v37 = vld [vmem:[#allocation2 + $0x28] sm:$0xf]  ;;  %v430_v38 = vld [vmem:[#allocation2 + $0x10] sm:$0xf]  ;;  %v1836_v31 = vmul.f32 %v688_v16, %v685_v15 }
  0xce   : > { %325 = vst.msk [vmem:[#allocation3 + $0x8] sm:$0xff] %vm323_vm3, %v321_v32  ;;  %v354_v40 = vld [vmem:[#allocation2 + $0x10] sm:$0xf]  ;;  %v449_v42 = vld [vmem:[#allocation2 + $0x28] sm:$0xf] }
  0xcf   : > { %327 = vst.msk [vmem:[#allocation3 + $0x10] sm:$0xf] %vm326_vm4, %v322_v33 }
  0xd1   : > { %v345_v34 = vld [vmem:[#allocation2 + $0x48] sm:$0xff] }
  0xd2   : > { %349 = vst.msk [vmem:[#allocation3 + $0x48] sm:$0xff] %vm323_vm3, %v345_v34  ;;  %v346_v35 = vld [vmem:[#allocation2 + $0x50] sm:$0xff]  ;;  %v347_v36 = vld [vmem:[#allocation2 + $0x58] sm:$0xf]  ;;  %434 = vrot.lane.b32.xlu1 %v320_v27, %s1569_s8 }
  0xd3   : > { %350 = vst.msk [vmem:[#allocation3 + $0x50] sm:$0xff] %vm323_vm3, %v346_v35  ;;  %v487_v41 = vld [vmem:[#allocation2 + $0x58] sm:$0xf] }
  0xd4   : > { %351 = vst.msk [vmem:[#allocation3 + $0x58] sm:$0xf] %vm326_vm4, %v347_v36  ;;  %415 = vrot.lane.b32.xlu2 %v345_v34, %s1568_s26  ;;  %v411_v43 = vld [vmem:[#allocation2 + $0x58] sm:$0xf] }
  0xd5   : > { %396 = vrot.lane.b32.xlu0 %v337_v18, %s1568_s26  ;;  %v528_v1 = vld [vmem:[#allocation3 + $0x2] sm:$0xff] }
  0xd6   : > { %v532_v10 = vmul.f32 %v531_v2, %v528_v1  ;;  %v552_v17 = vld [vmem:[#allocation3 + $0x4] sm:$0xff] }
  0xda   : > { %455 = vrot.lane.b32.xlu1 %v330_v30, %s1569_s8  ;;  %v645_v30 = vstv %s1762_s10  ;;  %s1866_s10 = sld [smem:[#allocation8 + $0x185]] }
  0xdc   : > { %436 = vrot.lane.b32.xlu2 %v321_v32, %s1569_s8 }
  0xdd   : > { %417 = vrot.lane.b32.xlu0 %v346_v35, %s1568_s26 }
  0xe2   : > { %491 = vrot.lane.b32.xlu1 %v345_v34, %s1569_s8  ;;  %v594_v34 = vld [vmem:[#allocation3 + $0x18] sm:$0xff] }
  0xe4   : > { %472 = vrot.lane.b32.xlu2 %v337_v18, %s1569_s8  ;;  %v555_v18 = vstv %s1752_s30 }
  0xe5   : > { %453 = vrot.lane.b32.xlu0 %v329_v24, %s1569_s8  ;;  %v556_v33 = vmul.f32 %v555_v18, %v552_v17 }
  0xea   : > { %381 = vrot.lane.b32.xlu1 %v373_v37, %s1568_s26 }
  0xec   : > { %493 = vrot.lane.b32.xlu2 %v346_v35, %s1569_s8  ;;  %v618_v35 = vld [vmem:[#allocation3 + $0x1a] sm:$0xff] }
  0xed   : > { %474 = vrot.lane.b32.xlu0 %v338_v20, %s1569_s8  ;;  %v712_v20 = vstv %s1766_s12  ;;  %v1864_v58 = vmul.f32 %v621_v29, %v618_v35 }
  0xee   : > { %v1843_v37 = vmul.f32 %v712_v20, %v709_v19  ;;  %v800_v19 = vld [vmem:[#allocation3 + $0x4a] sm:$0xff] }
  0xf2   : > { %438 = vrot.lane.b32.xlu1 %v430_v38, %s1569_s8  ;;  %v1849_v38 = vmul.f32 %v736_v22, %v733_v21  ;;  %v824_v21 = vld [vmem:[#allocation3 + $0x4c] sm:$0xff] }
  0xf4   : > { %400 = vrot.lane.b32.xlu2 %v392_v39, %s1568_s26 }
  0xf5   : > { %362 = vrot.lane.b32.xlu0 %v354_v40, %s1568_s26 }
  0xfa   : > { %495 = vrot.lane.b32.xlu1 %v487_v41, %s1569_s8  ;;  %v571_v41 = vstv %s1803_s17  ;;  %s2242_s17 = sld [smem:[#allocation29_spill]] }
  0xfc   : > { %457 = vrot.lane.b32.xlu2 %v449_v42, %s1569_s8  ;;  %v642_v42 = vld [vmem:[#allocation3 + $0x1c] sm:$0xff] }
  0xfd   : > { %419 = vrot.lane.b32.xlu0 %v411_v43, %s1568_s26  ;;  %s1785_s26 = sld [smem:[#allocation8 + $0x183]]  ;;  %v779_v43 = vstv %s1777_s22 }
 0x105   : > { %476 = vrot.lane.b32.xlu0 %v468_v44, %s1569_s8  ;;  %s1787_s8 = sld [smem:[#allocation8 + $0x186]] }
 0x11d   : > { %v359_v45 = vpop.permute.xlu2 %358 }
 0x11e   : > { %368 = vst.msk [vmem:[#allocation3 + $0x60] sm:$0xff] %vm323_vm3, %v359_v45  ;;  %v787_v45 = vstv %s1800_s24  ;;  %s2243_s24 = smov %s2242_s17 }
 0x11f   : > { %s1451_s11 = scalar_lea.hbm %s2243_s24, 2 }
 0x125   : > { %v512_v55 = vld [vmem:[#allocation3 + $0x60] sm:$0xff] }
 0x126   : > { %v380_v46 = vpop.permute.xlu2 %379  ;;  %v516_v60 = vmul.f32 %v515_v56, %v512_v55  ;;  %v598_v55 = vmul.f32 %v597_v25, %v594_v34 }
 0x127   : > { %388 = vst.msk [vmem:[#allocation3 + $0x80] sm:$0xff] %vm323_vm3, %v380_v46  ;;  %v803_v46 = vstv %s1785_s26 }
 0x128   : > { %v518_v3 = vadd.f32 %v516_v60, %v508_v61  ;;  %v776_v61 = vld [vmem:[#allocation3 + $0x48] sm:$0xff] }
 0x129   : > { %v780_v17 = vmul.f32 %v779_v43, %v776_v61 }
 0x12e   : > { %v416_v47 = vpop.permute.xlu2 %415  ;;  %v603_v60 = vld [vmem:[#allocation3 + $0x80] sm:$0xff] }
 0x12f   : > { %425 = vst.msk [vmem:[#allocation3 + $0xa8] sm:$0xff] %vm323_vm3, %v416_v47 }
 0x134   : > { %v378_v48 = vpop.permute.xlu1 %377 }
 0x135   : > { %387 = vst.msk [vmem:[#allocation3 + $0x78] sm:$0xff] %vm323_vm3, %v378_v48 }
 0x136   : > { %v437_v49 = vpop.permute.xlu2 %436  ;;  %v784_v44 = vld [vmem:[#allocation3 + $0xa8] sm:$0xff] }
 0x137   : > { %445 = vst.msk [vmem:[#allocation3 + $0xc8] sm:$0xff] %vm323_vm3, %v437_v49 }
 0x13c   : > { %v399_v50 = vpop.permute.xlu1 %398  ;;  %v626_v61 = vld [vmem:[#allocation3 + $0x7a] sm:$0xff] }
 0x13d   : > { %407 = vst.msk [vmem:[#allocation3 + $0x98] sm:$0xff] %vm323_vm3, %v399_v50  ;;  %v595_v50 = vld [vmem:[#allocation3 + $0x20] sm:$0xff] }
 0x13e   : > { %v473_v51 = vpop.permute.xlu2 %472 }
 0x13f   : > { %v361_v52 = vpop.permute.xlu0 %360  ;;  %482 = vst.msk [vmem:[#allocation3 + $0xf0] sm:$0xff] %vm323_vm3, %v473_v51  ;;  %v619_v51 = vld [vmem:[#allocation3 + $0x22] sm:$0xff] }
 0x140   : > { %369 = vst.msk [vmem:[#allocation3 + $0x68] sm:$0xff] %vm323_vm3, %v361_v52  ;;  %v643_v52 = vld [vmem:[#allocation3 + $0x24] sm:$0xff] }
 0x144   : > { %v435_v53 = vpop.permute.xlu1 %434 }
 0x145   : > { %444 = vst.msk [vmem:[#allocation3 + $0xc0] sm:$0xff] %vm323_vm3, %v435_v53  ;;  %v827_v53 = vstv %s1787_s8 }
 0x146   : > { %v494_v54 = vpop.permute.xlu2 %493 }
 0x147   : > { %v397_v57 = vpop.permute.xlu0 %396  ;;  %502 = vst.msk [vmem:[#allocation3 + $0x110] sm:$0xff] %vm323_vm3, %v494_v54  ;;  %v536_v6 = vld [vmem:[#allocation3 + $0x62] sm:$0xff]  ;;  %v696_v54 = vstv %s1808_s16 }
 0x148   : > { %406 = vst.msk [vmem:[#allocation3 + $0x90] sm:$0xff] %vm323_vm3, %v397_v57  ;;  %v540_v14 = vmul.f32 %v539_v7, %v536_v6  ;;  %v560_v27 = vld [vmem:[#allocation3 + $0x64] sm:$0xff]  ;;  %v605_v57 = vstv %s1791_s1  ;;  %s1883_s1 = sld [smem:[#allocation8 + $0x107]] }
 0x149   : > { %v564_v49 = vmul.f32 %v563_v28, %v560_v27  ;;  %v505_v6 = vld [vmem:[#allocation3 + $0x8] sm:$0xff]  ;;  %v607_v15 = vmul.f32 %v605_v57, %v603_v60 }
 0x14c   : > { %v456_v62 = vpop.permute.xlu1 %455  ;;  %v520_v63 = vld [vmem:[#allocation3 + $0xc0] sm:$0xff] }
 0x14d   : > { %464 = vst.msk [vmem:[#allocation3 + $0xe0] sm:$0xff] %vm323_vm3, %v456_v62  ;;  %v524_v4 = vmul.f32 %v523_v0, %v520_v63  ;;  %v544_v11 = vld [vmem:[#allocation3 + $0xc2] sm:$0xff] }
 0x14e   : > { %v401_v5 = vpop.permute.xlu2 %400  ;;  %v548_v24 = vmul.f32 %v547_v12, %v544_v11  ;;  %v568_v40 = vld [vmem:[#allocation3 + $0xc4] sm:$0xff]  ;;  %v1879_v11 = vmul.f32 %v621_v29, %v619_v51  ;;  %v795_v29 = vstv %s1832_s4 }
 0x14f   : > { %v418_v8 = vpop.permute.xlu0 %417  ;;  %408 = vst.msk [vmem:[#allocation3 + $0xa0] sm:$0xf] %vm326_vm4, %v401_v5  ;;  %v526_v9 = vadd.f32 %v524_v4, %v518_v3  ;;  %v693_v36 = vld [vmem:[#allocation3 + $0x90] sm:$0xff]  ;;  %v572_v1 = vmul.f32 %v571_v41, %v568_v40  ;;  %v602_v3 = vld [vmem:[#allocation3 + $0x78] sm:$0xff]  ;;  %v1872_v4 = vmul.f32 %v645_v30, %v642_v42  ;;  %v788_v5 = vmul.f32 %v787_v45, %v784_v44 }
 0x150   : > { %426 = vst.msk [vmem:[#allocation3 + $0xb0] sm:$0xff] %vm323_vm3, %v418_v8  ;;  %v697_v62 = vmul.f32 %v696_v54, %v693_v36  ;;  %v613_v8 = vstv %s1820_s28  ;;  %s1893_s28 = sld [smem:[#allocation8 + $0x188]]  ;;  %v828_v40 = vmul.f32 %v827_v53, %v824_v21 }
 0x151   : > { %v534_v13 = vadd.f32 %v532_v10, %v526_v9  ;;  %v599_v9 = vmul.f32 %v597_v25, %v595_v50  ;;  %v790_v35 = vadd.f32 %v788_v5, %v780_v17  ;;  %v835_v17 = vstv %s1876_s2  ;;  %s2240_s2 = sld [smem:[#allocation21_spill]] }
 0x153   : > { %v542_v23 = vadd.f32 %v540_v14, %v534_v13  ;;  %v1881_v13 = vmul.f32 %v645_v30, %v643_v52  ;;  %v1897_v30 = vmul.f32 %v507_v59, %v505_v6  ;;  %v804_v59 = vmul.f32 %v803_v46, %v800_v19  ;;  %v513_v52 = vld [vmem:[#allocation3 + $0x68] sm:$0xff] }
 0x154   : > { %v492_v26 = vpop.permute.xlu1 %491  ;;  %v611_v10 = vld [vmem:[#allocation3 + $0xe0] sm:$0xff]  ;;  %v609_v50 = vadd.f32 %v607_v15, %v599_v9 }
 0x155   : > { %501 = vst.msk [vmem:[#allocation3 + $0x108] sm:$0xff] %vm323_vm3, %v492_v26  ;;  %v550_v32 = vadd.f32 %v548_v24, %v542_v23  ;;  %v701_v23 = vld [vmem:[#allocation3 + $0xf0] sm:$0xff]  ;;  %v704_v24 = vstv %s1827_s15  ;;  %v606_v26 = vmul.f32 %v605_v57, %v602_v3  ;;  %v615_v34 = vmul.f32 %v613_v8, %v611_v10  ;;  %v650_v3 = vld [vmem:[#allocation3 + $0x7c] sm:$0xff] }
 0x156   : > { %v458_v39 = vpop.permute.xlu2 %457  ;;  %v705_v42 = vmul.f32 %v704_v24, %v701_v23  ;;  %v720_v10 = vstv %s1845_s25  ;;  %v637_v23 = vstv %s1887_s3 }
 0x157   : > { %v454_v47 = vpop.permute.xlu0 %453  ;;  %465 = vst.msk [vmem:[#allocation3 + $0xe8] sm:$0xf] %vm326_vm4, %v458_v39  ;;  %v558_v48 = vadd.f32 %v556_v33, %v550_v32  ;;  %v699_v32 = vadd.f32 %v697_v62, %v1836_v31  ;;  %v808_v31 = vld [vmem:[#allocation3 + $0xaa] sm:$0xff]  ;;  %v811_v39 = vstv %s1855_s6  ;;  %v608_v57 = vadd.f32 %v606_v26, %v598_v55  ;;  %s1059_s4 = sand.u32 1, %s2240_s2  }
 0x158   : > { %463 = vst.msk [vmem:[#allocation3 + $0xd8] sm:$0xff] %vm323_vm3, %v454_v47  ;;  %v617_v5 = vadd.f32 %v615_v34, %v609_v50  ;;  %v812_v9 = vmul.f32 %v811_v39, %v808_v31  ;;  %v517_v55 = vmul.f32 %v515_v56, %v513_v52  ;;  %v832_v56 = vld [vmem:[#allocation3 + $0xac] sm:$0xff]  ;;  %s2118_s30 = scalar_lea.sflag [#allocation11], %s1059_s4 }
 0x159   : > { %v566_v63 = vadd.f32 %v564_v49, %v558_v48  ;;  %v629_v48 = vstv %s1812_s21  ;;  %v653_v49 = vstv %s1816_s18  ;;  %s1925_s21 = sld [smem:[#allocation8 + $0x88]]  ;;  %v521_v50 = vld [vmem:[#allocation3 + $0xc8] sm:$0xff]  ;;  %s1090_s18 = scalar_lea.hbm %s2242_s17, %s2240_s2 }
 0x15a   : > { %v630_v19 = vmul.f32 %v629_v48, %v626_v61  ;;  %v654_v34 = vmul.f32 %v653_v49, %v650_v3  ;;  %s1094_s23 = sshll.u32 %s1090_s18, 4  ;;  %s1095_s23 = int_to_ptr.hbm [resolvable:$true] %s1094_s23 }
 0x15b   : > { %v1885_v14 = vadd.f32 %v572_v1, %v566_v63  ;;  %v819_v63 = vstv %s1866_s10  ;;  %v707_v1 = vadd.f32 %v705_v42, %v699_v32  ;;  %v625_v42 = vadd.f32 %v1879_v11, %v617_v5  ;;  %s1445_s5 = sshra.s32 %s1095_s23, 4  ;;  %s1446_s5 = int_to_ptr.hbm [resolvable:$true] %s1445_s5 }
 0x15c   : > { %v382_v25 = vpop.permute.xlu1 %381  ;;  %v792_v27 = vld [vmem:[#allocation3 + $0x108] sm:$0xff]  ;;  %v836_v11 = vmul.f32 %v835_v17, %v832_v56  ;;  %s1447_s9 = scalar_lea.hbm %s1446_s5, 1  ;;  %p1452_p0 = scmp.lt.s32.totalorder %s1446_s5, %s2243_s24 }
 0x15d   : > { %389 = vst.msk [vmem:[#allocation3 + $0x88] sm:$0xf] %vm326_vm4, %v382_v25  ;;  %v578_v33 = vsel %vm323_vm3, %v1885_v14, 0.0  ;;  %v796_v36 = vmul.f32 %v795_v29, %v792_v27  ;;  %v816_v62 = vld [vmem:[#allocation3 + $0x10a] sm:$0xff]  ;;  %v717_v27 = vld [vmem:[#allocation3 + $0x92] sm:$0xff]  ;;  %v715_v31 = vadd.f32 %v1843_v37, %v707_v1  ;;  %p1448_p4 = scmp.ne.s32.totalorder %s1446_s5, %s1447_s9  ;;  %p1453_p3 = scmp.lt.s32.totalorder %s1451_s11, %s1447_s9 }
 0x15e   : > { %579 = vadd.xlane.f32.xlu2 %v578_v33  ;;  %576 = vst.msk [vmem:[%s1909_s19] sm:$0xff] %vm323_vm3, %v1885_v14  ;;  %v820_v26 = vmul.f32 %v819_v63, %v816_v62  ;;  %v721_v61 = vmul.f32 %v720_v10, %v717_v27 }
 0x15f   : > { %v475_v44 = vpop.permute.xlu0 %474  ;;  %v610_v47 = vld [vmem:[#allocation3 + $0xd8] sm:$0xff]  ;;  %v798_v51 = vadd.f32 %v796_v36, %v790_v35  ;;  %v635_v36 = vld [vmem:[#allocation3 + $0xe2] sm:$0xff]  ;;  %p1449_p6 = pnand %p1448_p4, %p1651_p11  ;;  %p1454_p5 = por %p1453_p3, %p1452_p0 }
 0x160   : > { %483 = vst.msk [vmem:[#allocation3 + $0xf8] sm:$0xff] %vm323_vm3, %v475_v44  ;;  %v614_v60 = vmul.f32 %v613_v8, %v610_v47  ;;  %v744_v8 = vstv %s1883_s1  ;;  %v634_v21 = vld [vmem:[#allocation3 + $0xda] sm:$0xff]  ;;  %v639_v1 = vmul.f32 %v637_v23, %v635_v36  ;;  %v777_v36 = vld [vmem:[#allocation3 + $0x50] sm:$0xff] }
 0x161   : > { %v806_v6 = vadd.f32 %v804_v59, %v798_v51  ;;  %v843_v59 = vstv %s1893_s28  ;;  %v728_v51 = vstv %s1905_s27  ;;  %v638_v52 = vmul.f32 %v637_v23, %v634_v21  ;;  %s1092_s27 = sshll.u32 %s241_s0, 4  ;;  %p1450_p13 = pneg %p1449_p6  ;;  %s1093_s27 = int_to_ptr.vmem [resolvable:$true] %s1092_s27 }
 0x162   : > { %v616_v15 = vadd.f32 %v614_v60, %v608_v57  ;;  %v840_v57 = vld [vmem:[#allocation3 + $0x10c] sm:$0xff]  ;;  %v519_v60 = vadd.f32 %v517_v55, %v1897_v30  ;;  %v661_v21 = vstv %s1925_s21 }
 0x163   : > { %v814_v25 = vadd.f32 %v812_v9, %v806_v6  ;;  %v525_v9 = vmul.f32 %v523_v0, %v521_v50  ;;  %v785_v55 = vld [vmem:[#allocation3 + $0xb0] sm:$0xff]  ;;  %v752_v0 = vstv %s1934_s13  ;;  %p1455_p8 = pnand %p1454_p5, %p1450_p13 }
 0x164   : > { %v439_v32 = vpop.permute.xlu1 %438  ;;  %v624_v33 = vadd.f32 %v1864_v58, %v616_v15  ;;  %v627_v35 = vld [vmem:[#allocation3 + $0x82] sm:$0xff]  ;;  %v723_v15 = vadd.f32 %v721_v61, %v715_v31 }
 0x165   : > { %446 = vst.msk [vmem:[#allocation3 + $0xd0] sm:$0xf] %vm326_vm4, %v439_v32  ;;  %v631_v44 = vmul.f32 %v629_v48, %v627_v35  ;;  %v822_v47 = vadd.f32 %v820_v26, %v814_v25  ;;  %v651_v6 = vld [vmem:[#allocation3 + $0x84] sm:$0xff]  ;;  %v844_v25 = vmul.f32 %v843_v59, %v840_v57  ;;  %v741_v26 = vld [vmem:[#allocation3 + $0x94] sm:$0xff] }
 0x166   : > { %v632_v58 = vadd.f32 %v630_v19, %v624_v33  ;;  %v658_v19 = vld [vmem:[#allocation3 + $0xdc] sm:$0xff]  ;;  %v659_v32 = vld [vmem:[#allocation3 + $0xe4] sm:$0xff]  ;;  %v527_v33 = vadd.f32 %v525_v9, %v519_v60  ;;  %v655_v31 = vmul.f32 %v653_v49, %v651_v6  ;;  %v745_v60 = vmul.f32 %v744_v8, %v741_v26  ;;  %v801_v26 = vld [vmem:[#allocation3 + $0x52] sm:$0xff] }
 0x167   : > { %v363_v37 = vpop.permute.xlu0 %362  ;;  %v633_v62 = vadd.f32 %v631_v44, %v625_v42  ;;  %v830_v3 = vadd.f32 %v828_v40, %v822_v47  ;;  %v725_v48 = vld [vmem:[#allocation3 + $0xf2] sm:$0xff]  ;;  %v529_v44 = vld [vmem:[#allocation3 + $0xa] sm:$0xff]  ;;  %v663_v61 = vmul.f32 %v661_v21, %v659_v32  ;;  %v781_v49 = vmul.f32 %v779_v43, %v777_v36 }
 0x168   : > { %370 = vst.msk [vmem:[#allocation3 + $0x70] sm:$0xf] %vm326_vm4, %v363_v37  ;;  %v640_v5 = vadd.f32 %v638_v52, %v632_v58  ;;  %v729_v30 = vmul.f32 %v728_v51, %v725_v48  ;;  %v749_v47 = vld [vmem:[#allocation3 + $0xf4] sm:$0xff]  ;;  %v662_v52 = vmul.f32 %v661_v21, %v658_v19  ;;  %v553_v21 = vld [vmem:[#allocation3 + $0xc] sm:$0xff] }
 0x169   : > { %v641_v23 = vadd.f32 %v639_v1, %v633_v62  ;;  %v838_v40 = vadd.f32 %v836_v11, %v830_v3  ;;  %v753_v62 = vmul.f32 %v752_v0, %v749_v47  ;;  %v694_v1 = vld [vmem:[#allocation3 + $0x98] sm:$0xff] }
 0x16a   : > { %v648_v27 = vadd.f32 %v1872_v4, %v640_v5  ;;  %v731_v35 = vadd.f32 %v729_v30, %v723_v15  ;;  %v789_v4 = vmul.f32 %v787_v45, %v785_v55  ;;  %v533_v45 = vmul.f32 %v531_v2, %v529_v44  ;;  %v686_v30 = vld [vmem:[#allocation3 + $0x38] sm:$0xff] }
 0x16b   : > { %v649_v56 = vadd.f32 %v1881_v13, %v641_v23  ;;  %v1965_v42 = vadd.f32 %v844_v25, %v838_v40  ;;  %v702_v55 = vld [vmem:[#allocation3 + $0xf8] sm:$0xff] }
 0x16c   : > { %v496_v50 = vpop.permute.xlu1 %495  ;;  %v656_v58 = vadd.f32 %v654_v34, %v648_v27  ;;  %v739_v57 = vadd.f32 %v1849_v38, %v731_v35  ;;  %v793_v38 = vld [vmem:[#allocation3 + $0x110] sm:$0xff]  ;;  %v791_v5 = vadd.f32 %v789_v4, %v781_v49  ;;  %v535_v6 = vadd.f32 %v533_v45, %v527_v33 }
 0x16d   : > { %503 = vst.msk [vmem:[#allocation3 + $0x118] sm:$0xf] %vm326_vm4, %v496_v50  ;;  %v657_v13 = vadd.f32 %v655_v31, %v649_v56  ;;  %v545_v48 = vld [vmem:[#allocation3 + $0xca] sm:$0xff]  ;;  %v797_v23 = vmul.f32 %v795_v29, %v793_v38  ;;  %v690_v33 = vmul.f32 %v688_v16, %v686_v30  ;;  %v706_v29 = vmul.f32 %v704_v24, %v702_v55  ;;  %v710_v24 = vld [vmem:[#allocation3 + $0x3a] sm:$0xff] }
 0x16e   : > { %v1975_v37 = vadd.f32 %v662_v52, %v656_v58  ;;  %1300 = vst.msk [vmem:[%s1909_s19 + $0x30] sm:$0xff] %vm323_vm3, %v1965_v42  ;;  %v747_v34 = vadd.f32 %v745_v60, %v739_v57  ;;  %v549_v25 = vmul.f32 %v547_v12, %v545_v48  ;;  %v569_v36 = vld [vmem:[#allocation3 + $0xcc] sm:$0xff]  ;;  %v805_v56 = vmul.f32 %v803_v46, %v801_v26  ;;  %v825_v60 = vld [vmem:[#allocation3 + $0x54] sm:$0xff]  ;;  %v742_v30 = vld [vmem:[#allocation3 + $0x9c] sm:$0xff] }
 0x16f   : > { %v420_v3 = vpop.permute.xlu0 %419  ;;  %v1984_v11 = vadd.f32 %v663_v61, %v657_v13  ;;  %v537_v43 = vld [vmem:[#allocation3 + $0x6a] sm:$0xff]  ;;  %v799_v32 = vadd.f32 %v797_v23, %v791_v5  ;;  %v573_v46 = vmul.f32 %v571_v41, %v569_v36  ;;  %v714_v45 = vmul.f32 %v712_v20, %v710_v24  ;;  %v718_v41 = vld [vmem:[#allocation3 + $0x9a] sm:$0xff] }
 0x170   : > { %427 = vst.msk [vmem:[#allocation3 + $0xb8] sm:$0xf] %vm326_vm4, %v420_v3  ;;  %v669_v2 = vsel %vm323_vm3, %v1975_v37, 0.0  ;;  %v541_v9 = vmul.f32 %v539_v7, %v537_v43  ;;  %v1991_v15 = vadd.f32 %v753_v62, %v747_v34  ;;  %v698_v7 = vmul.f32 %v696_v54, %v694_v1  ;;  %v561_v27 = vld [vmem:[#allocation3 + $0x6c] sm:$0xff]  ;;  %v734_v5 = vld [vmem:[#allocation3 + $0x3c] sm:$0xff] }
 0x171   : > { %670 = vadd.xlane.f32.xlu1 %v669_v2  ;;  %1278 = vst.msk [vmem:[%s1909_s19 + $0x10] sm:$0xff] %vm323_vm3, %v1975_v37  ;;  %v672_v19 = vsel %vm323_vm3, %v1984_v11, 0.0  ;;  %v557_v54 = vmul.f32 %v555_v18, %v553_v21  ;;  %v565_v44 = vmul.f32 %v563_v28, %v561_v27  ;;  %v807_v4 = vadd.f32 %v805_v56, %v799_v32 }
 0x172   : > { %673 = vadd.xlane.f32.xlu2 %v672_v19  ;;  %1279 = vst.msk [vmem:[%s1909_s19 + $0x18] sm:$0xff] %vm323_vm3, %v1984_v11  ;;  %v543_v40 = vadd.f32 %v541_v9, %v535_v6  ;;  %v700_v31 = vadd.f32 %v698_v7, %v690_v33  ;;  %v851_v18 = vsel %vm323_vm3, %v1965_v42, 0.0  ;;  %v760_v57 = vsel %vm323_vm3, %v1991_v15, 0.0 }
 0x173   : > { %1289 = vst.msk [vmem:[%s1909_s19 + $0x20] sm:$0xff] %vm323_vm3, %v1991_v15  ;;  %v829_v38 = vmul.f32 %v827_v53, %v825_v60  ;;  %v722_v43 = vmul.f32 %v720_v10, %v718_v41  ;;  %v738_v21 = vmul.f32 %v736_v22, %v734_v5 }
 0x174   : > { %v551_v35 = vadd.f32 %v549_v25, %v543_v40  ;;  %v817_v16 = vld [vmem:[#allocation3 + $0x112] sm:$0xff]  ;;  %v708_v58 = vadd.f32 %v706_v29, %v700_v31 }
 0x175   : > { %v821_v49 = vmul.f32 %v819_v63, %v817_v16  ;;  %v841_v3 = vld [vmem:[#allocation3 + $0x114] sm:$0xff] }
 0x176   : > { %v559_v12 = vadd.f32 %v557_v54, %v551_v35  ;;  %v716_v1 = vadd.f32 %v714_v45, %v708_v58  ;;  %v845_v6 = vmul.f32 %v843_v59, %v841_v3  ;;  %v746_v59 = vmul.f32 %v744_v8, %v742_v30 }
 0x177   : > { %v477_v47 = vpop.permute.xlu0 %476  ;;  %v809_v50 = vld [vmem:[#allocation3 + $0xb2] sm:$0xff] }
 0x178   : > { %484 = vst.msk [vmem:[#allocation3 + $0x100] sm:$0xf] %vm326_vm4, %v477_v47  ;;  %v567_v52 = vadd.f32 %v565_v44, %v559_v12  ;;  %v813_v28 = vmul.f32 %v811_v39, %v809_v50  ;;  %v833_v34 = vld [vmem:[#allocation3 + $0xb4] sm:$0xff]  ;;  %v724_v9 = vadd.f32 %v722_v43, %v716_v1 }
 0x179   : > { %852 = vadd.xlane.f32.xlu1 %v851_v18  ;;  %v837_v20 = vmul.f32 %v835_v17, %v833_v34 }
 0x17a   : > { %v2029_v13 = vadd.f32 %v573_v46, %v567_v52  ;;  %761 = vadd.xlane.f32.xlu2 %v760_v57  ;;  %v815_v61 = vadd.f32 %v813_v28, %v807_v4 }
 0x17c   : > { %v581_v39 = vsel %vm323_vm3, %v2029_v13, 0.0  ;;  %577 = vst.msk [vmem:[%s1909_s19 + $0x8] sm:$0xff] %vm323_vm3, %v2029_v13  ;;  %v823_v62 = vadd.f32 %v821_v49, %v815_v61 }
 0x17d   : > { %582 = vadd.xlane.f32.xlu0 %v581_v39 }
 0x17e   : > { %v831_v63 = vadd.f32 %v829_v38, %v823_v62 }
 0x17f   : > { %v726_v48 = vld [vmem:[#allocation3 + $0xfa] sm:$0xff] }
 0x180   : > { %v839_v2 = vadd.f32 %v837_v20, %v831_v63  ;;  %v730_v53 = vmul.f32 %v728_v51, %v726_v48  ;;  %v750_v17 = vld [vmem:[#allocation3 + $0xfc] sm:$0xff] }
 0x181   : > { %v754_v51 = vmul.f32 %v752_v0, %v750_v17 }
 0x182   : > { %v2050_v55 = vadd.f32 %v845_v6, %v839_v2  ;;  %v732_v19 = vadd.f32 %v730_v53, %v724_v9 }
 0x184   : > { %v854_v10 = vsel %vm323_vm3, %v2050_v55, 0.0  ;;  %1301 = vst.msk [vmem:[%s1909_s19 + $0x38] sm:$0xff] %vm323_vm3, %v2050_v55  ;;  %v740_v23 = vadd.f32 %v738_v21, %v732_v19 }
 0x185   : > { %855 = vadd.xlane.f32.xlu2 %v854_v10 }
 0x186   : > { %v748_v7 = vadd.f32 %v746_v59, %v740_v23 }
 0x188   : > { %v2063_v40 = vadd.f32 %v754_v51, %v748_v7 }
 0x18a   : > { %v763_v25 = vsel %vm323_vm3, %v2063_v40, 0.0  ;;  %1290 = vst.msk [vmem:[%s1909_s19 + $0x28] sm:$0xff] %vm323_vm3, %v2063_v40 }
 0x18b   : > { %764 = vadd.xlane.f32.xlu0 %v763_v25 }
 0x1d1   : > { %v580_v22 = vpop.xlane.xlu2 %579 }
 0x1e4   : > { %v671_v26 = vpop.xlane.xlu1 %670 }
 0x1e5   : > { %v674_v27 = vpop.xlane.xlu2 %673 }
 0x1e6   : > { %v675_v32 = vadd.f32 %v674_v27, %v671_v26 }
 0x1e8   : > { %v676_v33 = vrot.slane %v675_v32, 4 }
 0x1ea   : > { %v677_v29 = vadd.f32 %v676_v33, %v675_v32 }
 0x1ec   : > { %v678_v8 = vrot.slane %v677_v29, 2  ;;  %v853_v16 = vpop.xlane.xlu1 %852 }
 0x1ed   : > { %v762_v54 = vpop.xlane.xlu2 %761 }
 0x1ee   : > { %v679_v35 = vadd.f32 %v678_v8, %v677_v29 }
 0x1f0   : > { %v680_v36 = vrot.slane %v679_v35, 1  ;;  %v583_v0 = vpop.xlane.xlu0 %582 }
 0x1f1   : > { %v584_v56 = vadd.f32 %v583_v0, %v580_v22 }
 0x1f2   : > { %v681_v31 = vadd.f32 %v680_v36, %v679_v35 }
 0x1f3   : > { %v585_v12 = vrot.slane %v584_v56, 4 }
 0x1f4   : > { %v682_v44 = vmul.f32 0.00390625, %v681_v31 }
 0x1f5   : > { %v586_v47 = vadd.f32 %v585_v12, %v584_v56 }
 0x1f6   : > { %v2071_v4 = vsub.f32 %v1975_v37, %v682_v44  ;;  %v684_v62 = vsub.f32 %v1984_v11, %v682_v44 }
 0x1f7   : > { %v587_v50 = vrot.slane %v586_v47, 2 }
 0x1f8   : > { %v856_v58 = vpop.xlane.xlu2 %855  ;;  %v938_v24 = vmul.f32 %v2071_v4, %v2071_v4 }
 0x1f9   : > { %v588_v18 = vadd.f32 %v587_v50, %v586_v47  ;;  %v857_v52 = vadd.f32 %v856_v58, %v853_v16 }
 0x1fa   : > { %v940_v46 = vsel %vm323_vm3, %v938_v24, 0.0 }
 0x1fb   : > { %v589_v28 = vrot.slane %v588_v18, 1  ;;  %v858_v57 = vrot.slane %v857_v52, 4  ;;  %941 = vadd.xlane.f32.xlu2 %v940_v46 }
 0x1fd   : > { %v590_v60 = vadd.f32 %v589_v28, %v588_v18  ;;  %v859_v61 = vadd.f32 %v858_v57, %v857_v52 }
 0x1fe   : > { %v765_v49 = vpop.xlane.xlu0 %764 }
 0x1ff   : > { %v591_v45 = vmul.f32 0.00390625, %v590_v60  ;;  %v860_v34 = vrot.slane %v859_v61, 2  ;;  %v766_v37 = vadd.f32 %v765_v49, %v762_v54 }
 0x201   : > { %v767_v41 = vrot.slane %v766_v37, 4  ;;  %v593_v39 = vsub.f32 %v2029_v13, %v591_v45  ;;  %v592_v38 = vsub.f32 %v1885_v14, %v591_v45  ;;  %v861_v1 = vadd.f32 %v860_v34, %v859_v61 }
 0x202   : > { %v939_v13 = vmul.f32 %v684_v62, %v684_v62  ;;  %v868_v21 = vsel %vm867_vm5, %v591_v45, %v682_v44 }
 0x203   : > { %v768_v3 = vadd.f32 %v767_v41, %v766_v37  ;;  %v891_v63 = vmul.f32 %v684_v62, %v593_v39  ;;  %v890_v20 = vmul.f32 %v2071_v4, %v592_v38  ;;  %v862_v2 = vrot.slane %v861_v1, 1 }
 0x204   : > { %v943_v30 = vsel %vm323_vm3, %v939_v13, 0.0  ;;  %v876_v32 = vmul.f32 %v593_v39, %v593_v39 }
 0x205   : > { %v769_v43 = vrot.slane %v768_v3, 2  ;;  %v895_v48 = vsel %vm323_vm3, %v891_v63, 0.0  ;;  %v892_v5 = vsel %vm323_vm3, %v890_v20, 0.0  ;;  %v863_v53 = vadd.f32 %v862_v2, %v861_v1 }
 0x206   : > { %896 = vadd.xlane.f32.xlu1 %v895_v48  ;;  %893 = vadd.xlane.f32.xlu0 %v892_v5  ;;  %v880_v54 = vsel %vm323_vm3, %v876_v32, 0.0 }
 0x207   : > { %v770_v6 = vadd.f32 %v769_v43, %v768_v3  ;;  %v864_v19 = vmul.f32 0.00390625, %v863_v53 }
 0x209   : > { %v771_v9 = vrot.slane %v770_v6, 1  ;;  %v866_v8 = vsub.f32 %v2050_v55, %v864_v19  ;;  %v865_v35 = vsub.f32 %v1965_v42, %v864_v19 }
 0x20b   : > { %v772_v11 = vadd.f32 %v771_v9, %v770_v6  ;;  %v921_v36 = vmul.f32 %v866_v8, %v593_v39  ;;  %v920_v0 = vmul.f32 %v865_v35, %v592_v38  ;;  %v968_v56 = vmul.f32 %v865_v35, %v2071_v4 }
 0x20c   : > { %v969_v42 = vmul.f32 %v866_v8, %v684_v62  ;;  %v1019_v18 = vmul.f32 %v865_v35, %v865_v35  ;;  %v1020_v57 = vmul.f32 %v866_v8, %v866_v8 }
 0x20d   : > { %v773_v14 = vmul.f32 0.00390625, %v772_v11  ;;  %v925_v31 = vsel %vm323_vm3, %v921_v36, 0.0  ;;  %v922_v12 = vsel %vm323_vm3, %v920_v0, 0.0  ;;  %v970_v44 = vsel %vm323_vm3, %v968_v56, 0.0 }
 0x20e   : > { %944 = vadd.xlane.f32.xlu0 %v943_v30  ;;  %v973_v16 = vsel %vm323_vm3, %v969_v42, 0.0  ;;  %v1021_v28 = vsel %vm323_vm3, %v1019_v18, 0.0  ;;  %v1024_v60 = vsel %vm323_vm3, %v1020_v57, 0.0 }
 0x20f   : > { %v775_v17 = vsub.f32 %v2063_v40, %v773_v14  ;;  %v774_v10 = vsub.f32 %v1991_v15, %v773_v14  ;;  %v870_v23 = vsel %vm869_vm6, %v868_v21, %v773_v14  ;;  %v875_v15 = vmul.f32 %v592_v38, %v592_v38 }
 0x210   : > { %v872_v59 = vsel %vm871_vm7, %v870_v23, %v864_v19 }
 0x211   : > { %v906_v7 = vmul.f32 %v775_v17, %v593_v39  ;;  %v905_v51 = vmul.f32 %v774_v10, %v592_v38  ;;  %v953_v25 = vmul.f32 %v774_v10, %v2071_v4  ;;  %874 = vst.msk [vmem:[%s241_s0] sm:$0x1] %vm873_vm8, %v872_v59  ;;  %v954_v27 = vmul.f32 %v775_v17, %v684_v62 }
 0x212   : > { %v877_v33 = vsel %vm323_vm3, %v875_v15, 0.0  ;;  %v986_v55 = vmul.f32 %v774_v10, %v774_v10  ;;  %v987_v47 = vmul.f32 %v775_v17, %v775_v17  ;;  %v1002_v58 = vmul.f32 %v866_v8, %v775_v17 }
 0x213   : > { %v910_v22 = vsel %vm323_vm3, %v906_v7, 0.0  ;;  %v907_v26 = vsel %vm323_vm3, %v905_v51, 0.0  ;;  %v955_v40 = vsel %vm323_vm3, %v953_v25, 0.0  ;;  %v958_v29 = vsel %vm323_vm3, %v954_v27, 0.0 }
 0x214   : > { %911 = vadd.xlane.f32.xlu2 %v910_v22  ;;  %908 = vadd.xlane.f32.xlu1 %v907_v26  ;;  %v988_v50 = vsel %vm323_vm3, %v986_v55, 0.0  ;;  %v991_v4 = vsel %vm323_vm3, %v987_v47, 0.0  ;;  %v1001_v24 = vmul.f32 %v865_v35, %v774_v10  ;;  %v1006_v52 = vsel %vm323_vm3, %v1002_v58, 0.0 }
 0x216   : > { %956 = vadd.xlane.f32.xlu0 %v955_v40  ;;  %v1003_v46 = vsel %vm323_vm3, %v1001_v24, 0.0 }
 0x21c   : > { %878 = vadd.xlane.f32.xlu2 %v877_v33  ;;  %959 = vadd.xlane.f32.xlu1 %v958_v29 }
 0x21e   : > { %881 = vadd.xlane.f32.xlu0 %v880_v54 }
 0x224   : > { %926 = vadd.xlane.f32.xlu2 %v925_v31  ;;  %923 = vadd.xlane.f32.xlu1 %v922_v12 }
 0x226   : > { %971 = vadd.xlane.f32.xlu0 %v970_v44 }
 0x22c   : > { %989 = vadd.xlane.f32.xlu2 %v988_v50  ;;  %974 = vadd.xlane.f32.xlu1 %v973_v16 }
 0x22e   : > { %992 = vadd.xlane.f32.xlu0 %v991_v4 }
 0x234   : > { %1007 = vadd.xlane.f32.xlu2 %v1006_v52  ;;  %1004 = vadd.xlane.f32.xlu1 %v1003_v46 }
 0x236   : > { %1022 = vadd.xlane.f32.xlu0 %v1021_v28 }
 0x23c   : > { %1025 = vadd.xlane.f32.xlu1 %v1024_v60 }
 0x23d   : > { %1458 = shalt.err (!%p1455_p8)
}
 0x23e   : > { %1318 = dma.vmem_to_hbm [thread:$0]  (%p1651_p11), %s1093_s27, 16, %s1095_s23, %s2118_s30  }
 0x23f   : > { %s1310_s29 = sshll.u32 %s2240_s2, 6  ;;  %s1076_s26 = sshll.u32 %s1909_s19, 4  ;;  %s1077_s26 = int_to_ptr.vmem [resolvable:$true] %s1076_s26 }
 0x240   : > { %s2244_s6 = sld [smem:[#allocation28_spill]]  ;;  %s1055_s28 = scalar_lea.sflag [#allocation6], %s1696_s14 }
 0x246   : > { %s1075_s10 = scalar_lea.hbm %s2244_s6, %s1310_s29  ;;  %s1479_s15 = scalar_lea.hbm %s2244_s6, 128 }
 0x247   : > { %s1078_s1 = sshll.u32 %s1075_s10, 4  ;;  %s1079_s1 = int_to_ptr.hbm [resolvable:$true] %s1078_s1 }
 0x248   : > { %s1473_s21 = sshra.s32 %s1079_s1, 4  ;;  %s1474_s21 = int_to_ptr.hbm [resolvable:$true] %s1473_s21 }
 0x249   : > { %s1475_s13 = scalar_lea.hbm %s1474_s21, 64  ;;  %p1480_p2 = scmp.lt.s32.totalorder %s1474_s21, %s2244_s6 }
 0x24a   : > { %p1476_p9 = scmp.ne.s32.totalorder %s1474_s21, %s1475_s13  ;;  %p1481_p7 = scmp.lt.s32.totalorder %s1479_s15, %s1475_s13 }
 0x24c   : > { %p1477_p10 = pnand %p1476_p9, %p1651_p11  ;;  %p1482_p4 = por %p1481_p7, %p1480_p2 }
 0x24e   : > { %p1478_p1 = pneg %p1477_p10 }
 0x250   : > { %p1483_p6 = pnand %p1482_p4, %p1478_p1 }
 0x252   : > { %1486 = shalt.err (!%p1483_p6)
}
 0x253   : > { %s1570_s17 = smov 128   ;;  %s1571_s18 = smov 8   ;;  %vm1046_vm9 = vcmask 1040384   ;;  %vm1048_vm10 = vcmask 1041408   ;;  %vm1050_vm11 = vcmask 1042432   ;;  %vm1052_vm12 = vcmask 27648  }
 0x254   : > { %1317 = dma.vmem_to_hbm [thread:$0]  (%p1651_p11), %s1077_s26, 1024, %s1079_s1, %s1055_s28, %s1570_s17, %s1570_s17, %s1571_s18  }
 0x255   : > { %s1260_s27 = sshll.u32 %s1696_s14, 2  ;;  %s1306_s23 = sshll.u32 %s2240_s2, 2 }
 0x256   : > { %s2245_s12 = sld [smem:[#allocation30_spill]]  ;;  %s248_s14 = scalar_lea.vmem [#allocation12], %s1260_s27 }
 0x257   : > { %s1106_s2 = sshll.u32 %s248_s14, 4  ;;  %s1107_s2 = int_to_ptr.vmem [resolvable:$true] %s1106_s2 }
 0x25c   : > { %s1104_s7 = scalar_lea.hbm %s2245_s12, %s1306_s23  ;;  %s1507_s8 = scalar_lea.hbm %s2245_s12, 8 }
 0x25d   : > { %s1108_s11 = sshll.u32 %s1104_s7, 4  ;;  %s1109_s11 = int_to_ptr.hbm [resolvable:$true] %s1108_s11 }
 0x25e   : > { %s1501_s20 = sshra.s32 %s1109_s11, 4  ;;  %s1502_s20 = int_to_ptr.hbm [resolvable:$true] %s1501_s20 }
 0x25f   : > { %s1503_s22 = scalar_lea.hbm %s1502_s20, 4  ;;  %p1508_p5 = scmp.lt.s32.totalorder %s1502_s20, %s2245_s12 }
 0x260   : > { %p1504_p13 = scmp.ne.s32.totalorder %s1502_s20, %s1503_s22  ;;  %p1509_p8 = scmp.lt.s32.totalorder %s1507_s8, %s1503_s22 }
 0x262   : > { %p1505_p0 = pnand %p1504_p13, %p1651_p11  ;;  %p1510_p9 = por %p1509_p8, %p1508_p5 }
 0x264   : > { %p1506_p3 = pneg %p1505_p0 }
 0x266   : > { %p1511_p10 = pnand %p1510_p9, %p1506_p3 }
 0x26e   : > { %v942_v49 = vpop.xlane.xlu2 %941 }
 0x279   : > { %v894_v61 = vpop.xlane.xlu0 %893  ;;  %v897_v45 = vpop.xlane.xlu1 %896 }
 0x27a   : > { %v898_v48 = vadd.f32 %v897_v45, %v894_v61 }
 0x27c   : > { %v899_v13 = vrot.slane %v898_v48, 4 }
 0x27e   : > { %v900_v51 = vadd.f32 %v899_v13, %v898_v48 }
 0x280   : > { %v901_v29 = vrot.slane %v900_v51, 2 }
 0x281   : > { %v945_v34 = vpop.xlane.xlu0 %944 }
 0x282   : > { %v946_v20 = vadd.f32 %v945_v34, %v942_v49  ;;  %v902_v47 = vadd.f32 %v901_v29, %v900_v51 }
 0x284   : > { %v947_v2 = vrot.slane %v946_v20, 4  ;;  %v903_v57 = vrot.slane %v902_v47, 1 }
 0x286   : > { %v948_v19 = vadd.f32 %v947_v2, %v946_v20 }
 0x287   : > { %v909_v37 = vpop.xlane.xlu1 %908  ;;  %v912_v41 = vpop.xlane.xlu2 %911 }
 0x288   : > { %v913_v6 = vadd.f32 %v912_v41, %v909_v37  ;;  %v949_v40 = vrot.slane %v948_v19, 2 }
 0x289   : > { %v957_v39 = vpop.xlane.xlu0 %956 }
 0x28a   : > { %v914_v21 = vrot.slane %v913_v6, 4  ;;  %v950_v31 = vadd.f32 %v949_v40, %v948_v19 }
 0x28c   : > { %v915_v15 = vadd.f32 %v914_v21, %v913_v6  ;;  %v951_v24 = vrot.slane %v950_v31, 1 }
 0x28e   : > { %v916_v12 = vrot.slane %v915_v15, 2 }
 0x28f   : > { %v960_v62 = vpop.xlane.xlu1 %959  ;;  %v879_v38 = vpop.xlane.xlu2 %878 }
 0x290   : > { %v961_v5 = vadd.f32 %v960_v62, %v957_v39  ;;  %v917_v18 = vadd.f32 %v916_v12, %v915_v15  ;;  %v952_v39 = vadd.f32 %v951_v24, %v950_v31 }
 0x291   : > { %v882_v1 = vpop.xlane.xlu0 %881 }
 0x292   : > { %v883_v9 = vadd.f32 %v882_v1, %v879_v38  ;;  %v962_v53 = vrot.slane %v961_v5, 4  ;;  %v918_v62 = vrot.slane %v917_v18, 1 }
 0x294   : > { %v884_v10 = vrot.slane %v883_v9, 4  ;;  %v963_v25 = vadd.f32 %v962_v53, %v961_v5  ;;  %v919_v6 = vadd.f32 %v918_v62, %v917_v18 }
 0x296   : > { %v885_v27 = vadd.f32 %v884_v10, %v883_v9  ;;  %v964_v8 = vrot.slane %v963_v25, 2 }
 0x297   : > { %v924_v3 = vpop.xlane.xlu1 %923  ;;  %v927_v63 = vpop.xlane.xlu2 %926 }
 0x298   : > { %v928_v23 = vadd.f32 %v927_v63, %v924_v3  ;;  %v886_v44 = vrot.slane %v885_v27, 2  ;;  %v965_v50 = vadd.f32 %v964_v8, %v963_v25 }
 0x299   : > { %v972_v43 = vpop.xlane.xlu0 %971 }
 0x29a   : > { %v929_v32 = vrot.slane %v928_v23, 4  ;;  %v887_v52 = vadd.f32 %v886_v44, %v885_v27  ;;  %v966_v60 = vrot.slane %v965_v50, 1 }
 0x29c   : > { %v930_v55 = vadd.f32 %v929_v32, %v928_v23  ;;  %v888_v38 = vrot.slane %v887_v52, 1  ;;  %v967_v20 = vadd.f32 %v966_v60, %v965_v50 }
 0x29e   : > { %v931_v46 = vrot.slane %v930_v55, 2  ;;  %v889_v53 = vadd.f32 %v888_v38, %v887_v52  ;;  %v1016_v19 = vsel %vm867_vm5, %v919_v6, %v967_v20 }
 0x29f   : > { %v975_v11 = vpop.xlane.xlu1 %974  ;;  %v990_v14 = vpop.xlane.xlu2 %989 }
 0x2a0   : > { %v976_v30 = vadd.f32 %v975_v11, %v972_v43  ;;  %v932_v1 = vadd.f32 %v931_v46, %v930_v55  ;;  %v904_v43 = vadd.f32 %v903_v57, %v902_v47 }
 0x2a1   : > { %v993_v17 = vpop.xlane.xlu0 %992 }
 0x2a2   : > { %v977_v59 = vrot.slane %v976_v30, 4  ;;  %v994_v7 = vadd.f32 %v993_v17, %v990_v14  ;;  %v983_v13 = vsel %vm867_vm5, %v904_v43, %v952_v39  ;;  %v933_v11 = vrot.slane %v932_v1, 1 }
 0x2a4   : > { %v978_v22 = vadd.f32 %v977_v59, %v976_v30  ;;  %v995_v26 = vrot.slane %v994_v7, 4  ;;  %v984_v30 = vsel %vm869_vm6, %v983_v13, %v967_v20  ;;  %v935_v59 = vsel %vm867_vm5, %v889_v53, %v904_v43 }
 0x2a5   : > { %v936_v15 = vsel %vm869_vm6, %v935_v59, %v919_v6 }
 0x2a6   : > { %v996_v33 = vadd.f32 %v995_v26, %v994_v7  ;;  %v979_v36 = vrot.slane %v978_v22, 2  ;;  %v934_v7 = vadd.f32 %v933_v11, %v932_v1 }
 0x2a7   : > { %v1005_v35 = vpop.xlane.xlu1 %1004  ;;  %v1008_v54 = vpop.xlane.xlu2 %1007 }
 0x2a8   : > { %v997_v0 = vrot.slane %v996_v33, 2  ;;  %v1009_v56 = vadd.f32 %v1008_v54, %v1005_v35  ;;  %v980_v16 = vadd.f32 %v979_v36, %v978_v22  ;;  %v937_v32 = vsel %vm871_vm7, %v936_v15, %v934_v7 }
 0x2a9   : > { %v1023_v61 = vpop.xlane.xlu0 %1022 }
 0x2aa   : > { %v1010_v42 = vrot.slane %v1009_v56, 4  ;;  %v998_v4 = vadd.f32 %v997_v0, %v996_v33  ;;  %v981_v45 = vrot.slane %v980_v16, 1 }
 0x2ac   : > { %v1011_v58 = vadd.f32 %v1010_v42, %v1009_v56  ;;  %v999_v34 = vrot.slane %v998_v4, 1  ;;  %v982_v48 = vadd.f32 %v981_v45, %v980_v16 }
 0x2ae   : > { %v1012_v28 = vrot.slane %v1011_v58, 2  ;;  %v1000_v5 = vadd.f32 %v999_v34, %v998_v4  ;;  %v985_v21 = vsel %vm871_vm7, %v984_v30, %v982_v48  ;;  %v1034_v22 = vsel %vm867_vm5, %v934_v7, %v982_v48 }
 0x2af   : > { %v1026_v49 = vpop.xlane.xlu1 %1025  ;;  %v1038_v25 = vrot.slane %v985_v21, 7 }
 0x2b0   : > { %v1013_v37 = vadd.f32 %v1012_v28, %v1011_v58  ;;  %v1027_v41 = vadd.f32 %v1026_v49, %v1023_v61  ;;  %v1017_v17 = vsel %vm869_vm6, %v1016_v19, %v1000_v5 }
 0x2b1   : > { %v1047_v8 = vsel %vm1046_vm9, %v937_v32, %v1038_v25 }
 0x2b2   : > { %v1014_v3 = vrot.slane %v1013_v37, 1  ;;  %v1028_v63 = vrot.slane %v1027_v41, 4 }
 0x2b4   : > { %v1029_v2 = vadd.f32 %v1028_v63, %v1027_v41  ;;  %v1015_v9 = vadd.f32 %v1014_v3, %v1013_v37 }
 0x2b6   : > { %v1030_v14 = vrot.slane %v1029_v2, 2  ;;  %v1018_v23 = vsel %vm871_vm7, %v1017_v17, %v1015_v9  ;;  %v1035_v27 = vsel %vm869_vm6, %v1034_v22, %v1015_v9 }
 0x2b7   : > { %v1041_v26 = vrot.slane %v1018_v23, 6 }
 0x2b8   : > { %v1031_v10 = vadd.f32 %v1030_v14, %v1029_v2 }
 0x2b9   : > { %v1049_v35 = vsel %vm1048_vm10, %v1047_v8, %v1041_v26 }
 0x2ba   : > { %v1032_v51 = vrot.slane %v1031_v10, 1 }
 0x2bc   : > { %v1033_v40 = vadd.f32 %v1032_v51, %v1031_v10 }
 0x2be   : > { %v1036_v33 = vsel %vm871_vm7, %v1035_v27, %v1033_v40 }
 0x2bf   : > { %v1044_v29 = vrot.slane %v1036_v33, 5 }
 0x2c1   : > { %v1051_v54 = vsel %vm1050_vm11, %v1049_v35, %v1044_v29 }
 0x2c2   : > { %1053 = vst.msk [vmem:[%s248_s14] sm:$0xf] %vm1052_vm12, %v1051_v54 }
 0x2c3   : > { %1514 = shalt.err (!%p1511_p10)
}
 0x2c4   : > { %1319 = dma.vmem_to_hbm [thread:$0]  (%p1651_p11), %s1107_s2, 64, %s1109_s11, %s2118_s30  }
 0x2c5 PF: > { %s2246_s1 = sld [smem:[#allocation17_spill]] }
 0x2c6   : > { %s2248_s21 = sld [smem:[#allocation20_spill]] }
 0x2cb   : > { %s1120_s13 = sand.u32 1, %s2246_s1  }
 0x2cc   : > { %p2249_p1 = scmp.ge.s32.totalorder %s2248_s21, 2  ;;  %s1121_s0 = scalar_lea.sflag [#allocation6], %s1120_s13 }
 0x2ce   : > { %p1332_p2 = pnand %p2249_p1, %p1655_p12 }
 0x2d0   : > { %p1333_p7 = pneg %p1332_p2 }
 0x2d2   : > { %1540 = dma.done.wait (%p1333_p7), %s1121_s0, 1024  }
 0x2d3   : > { %1542 = vsyncadd (%p1333_p7), %s1121_s0, 4294966272  ;;  %s2250_s4 = sadd.s32 4294967294, %s2248_s21  }
 0x2d4   : > { %s1130_s15 = sand.u32 1, %s2250_s4  }
 0x2d5   : > { %s1131_s19 = scalar_lea.sflag [#allocation11], %s1130_s15 }
 0x2d6   : > { %1544 = dma.done.wait (%p1333_p7), %s1131_s19, 80  }
 0x2d7   : > { %1546 = vsyncadd (%p1333_p7), %s1131_s19, 4294967216  ;;  %s2251_s18 = sld [smem:[#allocation22_spill]] }
 0x2d8   : > { %s2252_s15 = sld [smem:[#allocation18_spill]] }
 0x2d9   : > { %s2253_s16 = sld [smem:[#allocation19_spill]] }
 0x2da   : > { %s2254_s17 = sld [smem:[#allocation23_spill]] }
 0x2dd   : > { %p22_p11 = scmp.ge.s32.totalorder %s2251_s18, 4  }
 0x2df   :  { %24 = sbr.rel (!%p22_p11) target bundleno = 14 (0xe), region = 127 }
 0x2e4   :  { %1146 = vsyncpa [#allocation5], 1 }
 0x2e5   :  { %1148 = vsyncpa [#allocation5 + $0x1], 1 }
 0x2e6   :  { %1149 = vsyncpa [#allocation6], 1 }
 0x2e7   :  { %1151 = vsyncpa [#allocation6 + $0x1], 1 }
 0x2e8   :  { %1152 = vsyncpa [#allocation11], 1 }
 0x2e9   :  { %1154 = vsyncpa [#allocation11 + $0x1], 1 }
 0x2ea   :  { %1155 = vsyncpa [#allocation7], 1 }
 0x2eb   :  { %1157 = vsyncpa [#allocation7 + $0x1], 1 }

</bundles_post_ra>
